<compile_context>
chip_gen: v5e
topology: v5e:2x2
jax: 0.10.0
libtpu: 0.0.40
codegen_flags: <defaults>
</compile_context>

<pallas_src>
import jax
import jax.numpy as jnp
from jax.experimental import pallas as pl
from jax.experimental.pallas import tpu as pltpu

_EPS = 1e-5
_VMEM_LIMIT = 48 * 1024 * 1024          # <= v7x's 64 MiB physical VMEM
_TAPS = [(dy, dx) for dy in (-1, 0, 1) for dx in (-1, 0, 1)]


# ------------------------------ kernel bodies --------------------------------

def _make_conv_kernel(pre_affine_relu, H, W, bt, cin, cout):
    """3x3 conv (pad=1, stride=1) on Bt lane-flat samples + per-block BN stats.

    Taps are built with pltpu.roll along the flat H*W lane axis plus a
    precomputed halo mask, cast to bf16 into an im2col patch scratch, and fed
    to one (Cout, 9*Cin) @ (9*Cin, H*W) MXU matmul per sample (f32 accumulate).
    Optionally applies the folded BN1 affine + ReLU to the input first.
    """
    hw = H * W

    def body(a_ref, w_ref, m_ref, y_ref, st_ref, patch_ref, s_ref, t_ref):
        wv = w_ref[...]                                   # (cout, 9*cin) bf16
        mrow = [m_ref[k:k + 1, :] for k in range(9)]      # (1, hw) halo masks
        if pre_affine_relu:
            sv, tv = s_ref[...], t_ref[...]               # (cin, 1) f32
        ssum = jnp.zeros((cout, 1), jnp.float32)
        ssq = jnp.zeros((cout, 1), jnp.float32)
        for b in range(bt):                               # static, small
            ab = a_ref[b]                                 # (cin, hw) f32
            if pre_affine_relu:
                ab = jnp.maximum(ab * sv + tv, 0.0)       # folded bn1 + relu
            for t_idx, (dy, dx) in enumerate(_TAPS):
                if (dy, dx) == (0, 0):
                    tapv = ab                             # center tap: as-is
                else:
                    shift = (-(dy * W + dx)) % hw
                    tapv = pltpu.roll(ab, shift=shift, axis=1) * mrow[t_idx]
                patch_ref[t_idx * cin:(t_idx + 1) * cin, :] = (
                    tapv.astype(jnp.bfloat16))
            yb = jnp.dot(wv, patch_ref[...],
                         preferred_element_type=jnp.float32)     # (cout, hw)
            y_ref[b] = yb
            ssum = ssum + jnp.sum(yb, axis=1, keepdims=True)
            ssq = ssq + jnp.sum(yb * yb, axis=1, keepdims=True)
        st_ref[0:1, :, 0:1] = ssum[None]
        st_ref[0:1, :, 1:2] = ssq[None]

    if pre_affine_relu:
        def kernel(a_ref, s_ref, t_ref, w_ref, m_ref, y_ref, st_ref, patch_ref):
            body(a_ref, w_ref, m_ref, y_ref, st_ref, patch_ref, s_ref, t_ref)
    else:
        def kernel(a_ref, w_ref, m_ref, y_ref, st_ref, patch_ref):
            body(a_ref, w_ref, m_ref, y_ref, st_ref, patch_ref, None, None)
    return kernel


def _epilogue_kernel(y2_ref, x_ref, s_ref, t_ref, o_ref):
    """bn2 affine + identity residual + relu on lane-dense (Bt, C, H*W) blocks."""
    o_ref[...] = jnp.maximum(
        y2_ref[...] * s_ref[...][None] + t_ref[...][None] + x_ref[...], 0.0)


# --------------------------- pallas_call builders -----------------------------

def _pick_bt(N, Cin, Cout, HW):
    """Largest batch tile (divisor of N) whose working set fits the VMEM budget."""
    budget = 40 * 1024 * 1024               # conservative vs v7x 64 MiB physical
    for bt in (8, 4, 2, 1):
        if N % bt:
            continue
        need = (8 * bt * HW * (Cin + Cout)  # double-buffered f32 act in/out blocks
                + 2 * 9 * Cin * HW          # bf16 im2col patch scratch
                + 2 * Cout * 9 * Cin        # bf16 resident weight
                + 4 * 9 * HW)               # f32 tap masks
        if need <= budget:
            return bt
    return 1


def _conv_call(pre_affine_relu, N, Cin, Cout, H, W, bt):
    HW = H * W
    G = N // bt
    blk_a = pl.BlockSpec((bt, Cin, HW), lambda i: (i, 0, 0))
    blk_y = pl.BlockSpec((bt, Cout, HW), lambda i: (i, 0, 0))
    blk_w = pl.BlockSpec((Cout, 9 * Cin), lambda i: (0, 0))     # VMEM-resident
    blk_m = pl.BlockSpec((9, HW), lambda i: (0, 0))             # VMEM-resident
    blk_st = pl.BlockSpec((1, Cout, 2), lambda i: (i, 0, 0))
    blk_c = pl.BlockSpec((Cin, 1), lambda i: (0, 0))
    in_specs = ([blk_a, blk_c, blk_c, blk_w, blk_m] if pre_affine_relu
                else [blk_a, blk_w, blk_m])

    flops = 2 * N * HW * Cout * 9 * Cin
    bytes_accessed = (4 * N * HW * (Cin + Cout) + 2 * Cout * 9 * Cin
                      + 4 * 9 * HW + 4 * G * Cout * 2)

    return pl.pallas_call(
        _make_conv_kernel(pre_affine_relu, H, W, bt, Cin, Cout),
        out_shape=(jax.ShapeDtypeStruct((N, Cout, HW), jnp.float32),
                   jax.ShapeDtypeStruct((G, Cout, 2), jnp.float32)),
        grid=(G,),
        in_specs=in_specs,
        out_specs=(blk_y, blk_st),
        scratch_shapes=[pltpu.VMEM((9 * Cin, HW), jnp.bfloat16)],   # im2col patch
        compiler_params=pltpu.CompilerParams(
            dimension_semantics=("parallel",),
            vmem_limit_bytes=_VMEM_LIMIT),
        cost_estimate=pl.CostEstimate(flops=flops, transcendentals=0,
                                      bytes_accessed=bytes_accessed),
    )


def _epilogue_call(N, C, HW, bt):
    G = N // bt
    blk = pl.BlockSpec((bt, C, HW), lambda i: (i, 0, 0))
    blk_c = pl.BlockSpec((C, 1), lambda i: (0, 0))
    return pl.pallas_call(
        _epilogue_kernel,
        out_shape=jax.ShapeDtypeStruct((N, C, HW), jnp.float32),
        grid=(G,),
        in_specs=[blk, blk, blk_c, blk_c],
        out_specs=blk,
        input_output_aliases={0: 0},        # reuse y2's HBM buffer for the output
        compiler_params=pltpu.CompilerParams(
            dimension_semantics=("parallel",),
            vmem_limit_bytes=_VMEM_LIMIT),
    )


# ------------------------------- JAX glue ------------------------------------

def _tap_masks(H, W):
    """(9, H*W) f32 validity masks: mask[t, p]=1 iff tap t of output pixel p
    lands inside the image (zero-padding halo positions are 0)."""
    HW = H * W
    p = jnp.arange(HW, dtype=jnp.int32)
    row, col = p // W, p % W
    ones = jnp.ones((HW,), bool)
    ms = []
    for dy, dx in _TAPS:
        ok = ones
        if dy == -1:
            ok = ok & (row >= 1)
        if dy == 1:
            ok = ok & (row <= H - 2)
        if dx == -1:
            ok = ok & (col >= 1)
        if dx == 1:
            ok = ok & (col <= W - 2)
        ms.append(ok)
    return jnp.stack(ms, axis=0).astype(jnp.float32)


def _fold_bn(stats, count, gamma, beta):
    """Fold whole-batch stats + affine params into per-channel (scale, shift)."""
    tot = jnp.sum(stats, axis=0)                               # (C, 2)
    mean = tot[:, 0] / count
    var = jnp.maximum(tot[:, 1] / count - mean * mean, 0.0)    # biased variance
    scale = gamma * jax.lax.rsqrt(var + _EPS)
    shift = beta - mean * scale
    return scale.reshape(-1, 1), shift.reshape(-1, 1)


@jax.jit
def basic_block_forward(x, w1, g1, b1, w2, g2, b2):
    """BasicBlock forward (stride=1, identity residual), training-mode BN.

    x: (N, C, H, W) f32; w1, w2: (C, C, 3, 3) OIHW (PyTorch layout); g*, b*: (C,)."""
    N, C, H, W = x.shape
    HW = H * W
    bt = _pick_bt(N, C, C, HW)
    x3 = x.reshape(N, C, HW)                                   # free reshape
    # (Cout, Cin, ky, kx) -> (Cout, ky, kx, Cin) -> (Cout, 9*Cin): K-order (ky,kx,ci)
    w1m = jnp.transpose(w1, (0, 2, 3, 1)).reshape(C, 9 * C).astype(jnp.bfloat16)
    w2m = jnp.transpose(w2, (0, 2, 3, 1)).reshape(C, 9 * C).astype(jnp.bfloat16)
    masks = _tap_masks(H, W)                                   # (9, HW) constants

    # pass 1: conv1 + per-block channel stats
    y1, st1 = _conv_call(False, N, C, C, H, W, bt)(x3, w1m, masks)
    s1, t1 = _fold_bn(st1, N * HW, g1, b1)                     # tiny per-channel math

    # pass 2: bn1 (folded affine) + relu + conv2 + per-block channel stats
    y2, st2 = _conv_call(True, N, C, C, H, W, bt)(y1, s1, t1, w2m, masks)
    s2, t2 = _fold_bn(st2, N * HW, g2, b2)

    # pass 3: bn2 (folded affine) + identity residual + relu
    out3 = _epilogue_call(N, C, HW, bt)(y2, x3, s2, t2)
    return out3.reshape(N, C, H, W)


# ------------------------------- reference -----------------------------------

def basic_block_reference(x, w1, g1, b1, w2, g2, b2):
    """Pure-JAX reference mirroring the PyTorch forward (training-mode BN)."""
    def conv(x_, w_):
        return jax.lax.conv_general_dilated(
            x_, w_, window_strides=(1, 1), padding=((1, 1), (1, 1)),
            dimension_numbers=("NCHW", "OIHW", "NCHW"))

    def bn(y, g, b):
        mean = jnp.mean(y, axis=(0, 2, 3), keepdims=True)
        var = jnp.mean((y - mean) ** 2, axis=(0, 2, 3), keepdims=True)
        return ((y - mean) / jnp.sqrt(var + _EPS)
                * g.reshape(1, -1, 1, 1) + b.reshape(1, -1, 1, 1))

    out = jnp.maximum(bn(conv(x, w1), g1, b1), 0.0)
    out = bn(conv(out, w2), g2, b2)
    return jnp.maximum(out + x, 0.0)


if __name__ == "__main__":
    # Small deterministic problem: inplanes = planes = 4, stride = 1.
    N, C, H, W = 2, 4, 16, 16
    key = jax.random.PRNGKey(0)
    kx, kw1, kw2, kg1, kb1, kg2, kb2 = jax.random.split(key, 7)

    x = jax.random.normal(kx, (N, C, H, W), dtype=jnp.float32)
    w1 = 0.1 * jax.random.normal(kw1, (C, C, 3, 3), dtype=jnp.float32)   # OIHW
    w2 = 0.1 * jax.random.normal(kw2, (C, C, 3, 3), dtype=jnp.float32)
    g1 = 1.0 + 0.1 * jax.random.normal(kg1, (C,), dtype=jnp.float32)
    b1 = 0.1 * jax.random.normal(kb1, (C,), dtype=jnp.float32)
    g2 = 1.0 + 0.1 * jax.random.normal(kg2, (C,), dtype=jnp.float32)
    b2 = 0.1 * jax.random.normal(kb2, (C,), dtype=jnp.float32)

    out = jax.block_until_ready(basic_block_forward(x, w1, g1, b1, w2, g2, b2))
    ref = basic_block_reference(x, w1, g1, b1, w2, g2, b2)

    assert out.shape == (N, C, H, W)
    err = float(jnp.max(jnp.abs(out - ref)))
    # bf16 MXU operands (f32 accumulation) -> looser tolerance than pure f32.
    assert jnp.allclose(out, ref, atol=5e-2, rtol=5e-2), f"max abs err = {err}"

    print("KERNEL_OK")
</pallas_src>

<mosaic_0001>
module attributes {stable_mosaic.version = 11 : i64} {
  func.func @kernel(%arg0: i32, %arg1: memref<2x4x256xf32, #tpu.memory_space<vmem>>, %arg2: memref<4x36xbf16, #tpu.memory_space<vmem>>, %arg3: memref<9x256xf32, #tpu.memory_space<vmem>>, %arg4: memref<2x4x256xf32, #tpu.memory_space<vmem>>, %arg5: memref<1x4x2xf32, #tpu.memory_space<vmem>>, %arg6: memref<36x256xbf16, #tpu.memory_space<vmem>>) attributes {dimension_semantics = [#tpu.dimension_semantics<parallel>], iteration_bounds = array<i64: 1>, scalar_prefetch = 0 : i64, scratch_operands = 1 : i64, tpu.core_type = #tpu.core_type<tc>, window_params = [{transform_indices = @transform_0, window_bounds = array<i64: 2, 4, 256>}, {pipeline_mode = #tpu.pipeline_mode<synchronous>, transform_indices = @transform_1, window_bounds = array<i64: 4, 36>}, {pipeline_mode = #tpu.pipeline_mode<synchronous>, transform_indices = @transform_2, window_bounds = array<i64: 9, 256>}, {transform_indices = @transform_3, window_bounds = array<i64: 2, 4, 256>}, {transform_indices = @transform_4, window_bounds = array<i64: 1, 4, 2>}]} {
    %c0 = arith.constant 0 : index
    %c0_0 = arith.constant 0 : index
    %0 = vector.load %arg2[%c0, %c0_0] : memref<4x36xbf16, #tpu.memory_space<vmem>>, vector<4x36xbf16>
    %c0_1 = arith.constant 0 : index
    %c0_2 = arith.constant 0 : index
    %1 = vector.load %arg3[%c0_1, %c0_2] : memref<9x256xf32, #tpu.memory_space<vmem>>, vector<1x256xf32>
    %c1 = arith.constant 1 : index
    %c0_3 = arith.constant 0 : index
    %2 = vector.load %arg3[%c1, %c0_3] : memref<9x256xf32, #tpu.memory_space<vmem>>, vector<1x256xf32>
    %c2 = arith.constant 2 : index
    %c0_4 = arith.constant 0 : index
    %3 = vector.load %arg3[%c2, %c0_4] : memref<9x256xf32, #tpu.memory_space<vmem>>, vector<1x256xf32>
    %c3 = arith.constant 3 : index
    %c0_5 = arith.constant 0 : index
    %4 = vector.load %arg3[%c3, %c0_5] : memref<9x256xf32, #tpu.memory_space<vmem>>, vector<1x256xf32>
    %c5 = arith.constant 5 : index
    %c0_6 = arith.constant 0 : index
    %5 = vector.load %arg3[%c5, %c0_6] : memref<9x256xf32, #tpu.memory_space<vmem>>, vector<1x256xf32>
    %c6 = arith.constant 6 : index
    %c0_7 = arith.constant 0 : index
    %6 = vector.load %arg3[%c6, %c0_7] : memref<9x256xf32, #tpu.memory_space<vmem>>, vector<1x256xf32>
    %c7 = arith.constant 7 : index
    %c0_8 = arith.constant 0 : index
    %7 = vector.load %arg3[%c7, %c0_8] : memref<9x256xf32, #tpu.memory_space<vmem>>, vector<1x256xf32>
    %c8 = arith.constant 8 : index
    %c0_9 = arith.constant 0 : index
    %8 = vector.load %arg3[%c8, %c0_9] : memref<9x256xf32, #tpu.memory_space<vmem>>, vector<1x256xf32>
    %cst = arith.constant 0.000000e+00 : f32
    %9 = vector.broadcast %cst : f32 to vector<4x1xf32>
    %cst_10 = arith.constant 0.000000e+00 : f32
    %10 = vector.broadcast %cst_10 : f32 to vector<4x1xf32>
    %c0_11 = arith.constant 0 : index
    %c0_12 = arith.constant 0 : index
    %c0_13 = arith.constant 0 : index
    %11 = vector.load %arg1[%c0_11, %c0_12, %c0_13] : memref<2x4x256xf32, #tpu.memory_space<vmem>>, vector<1x4x256xf32>
    %12 = vector.shape_cast %11 : vector<1x4x256xf32> to vector<4x256xf32>
    %c17_i32 = arith.constant 17 : i32
    %13 = tpu.dynamic_rotate %12 by %c17_i32 dim 1 : vector<4x256xf32>, i32 -> vector<4x256xf32>
    %14 = vector.broadcast %1 : vector<1x256xf32> to vector<4x256xf32>
    %15 = arith.mulf %13, %14 : vector<4x256xf32>
    %16 = arith.truncf %15 : vector<4x256xf32> to vector<4x256xbf16>
    %c0_14 = arith.constant 0 : index
    %c0_15 = arith.constant 0 : index
    %17 = vector.load %arg6[%c0_14, %c0_15] : memref<36x256xbf16, #tpu.memory_space<vmem>>, vector<4x256xbf16>
    tpu.vector_store %arg6[%c0_14, %c0_15], %16 {strides = array<i32>} : memref<36x256xbf16, #tpu.memory_space<vmem>>, vector<4x256xbf16>,
    %c16_i32 = arith.constant 16 : i32
    %18 = tpu.dynamic_rotate %12 by %c16_i32 dim 1 : vector<4x256xf32>, i32 -> vector<4x256xf32>
    %19 = vector.broadcast %2 : vector<1x256xf32> to vector<4x256xf32>
    %20 = arith.mulf %18, %19 : vector<4x256xf32>
    %21 = arith.truncf %20 : vector<4x256xf32> to vector<4x256xbf16>
    %c4 = arith.constant 4 : index
    %c0_16 = arith.constant 0 : index
    %22 = vector.load %arg6[%c4, %c0_16] : memref<36x256xbf16, #tpu.memory_space<vmem>>, vector<4x256xbf16>
    tpu.vector_store %arg6[%c4, %c0_16], %21 {strides = array<i32>} : memref<36x256xbf16, #tpu.memory_space<vmem>>, vector<4x256xbf16>,
    %c15_i32 = arith.constant 15 : i32
    %23 = tpu.dynamic_rotate %12 by %c15_i32 dim 1 : vector<4x256xf32>, i32 -> vector<4x256xf32>
    %24 = vector.broadcast %3 : vector<1x256xf32> to vector<4x256xf32>
    %25 = arith.mulf %23, %24 : vector<4x256xf32>
    %26 = arith.truncf %25 : vector<4x256xf32> to vector<4x256xbf16>
    %c8_17 = arith.constant 8 : index
    %c0_18 = arith.constant 0 : index
    %27 = vector.load %arg6[%c8_17, %c0_18] : memref<36x256xbf16, #tpu.memory_space<vmem>>, vector<4x256xbf16>
    tpu.vector_store %arg6[%c8_17, %c0_18], %26 {strides = array<i32>} : memref<36x256xbf16, #tpu.memory_space<vmem>>, vector<4x256xbf16>,
    %c1_i32 = arith.constant 1 : i32
    %28 = tpu.dynamic_rotate %12 by %c1_i32 dim 1 : vector<4x256xf32>, i32 -> vector<4x256xf32>
    %29 = vector.broadcast %4 : vector<1x256xf32> to vector<4x256xf32>
    %30 = arith.mulf %28, %29 : vector<4x256xf32>
    %31 = arith.truncf %30 : vector<4x256xf32> to vector<4x256xbf16>
    %c12 = arith.constant 12 : index
    %c0_19 = arith.constant 0 : index
    %32 = vector.load %arg6[%c12, %c0_19] : memref<36x256xbf16, #tpu.memory_space<vmem>>, vector<4x256xbf16>
    tpu.vector_store %arg6[%c12, %c0_19], %31 {strides = array<i32>} : memref<36x256xbf16, #tpu.memory_space<vmem>>, vector<4x256xbf16>,
    %33 = arith.truncf %12 : vector<4x256xf32> to vector<4x256xbf16>
    %c16 = arith.constant 16 : index
    %c0_20 = arith.constant 0 : index
    %34 = vector.load %arg6[%c16, %c0_20] : memref<36x256xbf16, #tpu.memory_space<vmem>>, vector<4x256xbf16>
    tpu.vector_store %arg6[%c16, %c0_20], %33 {strides = array<i32>} : memref<36x256xbf16, #tpu.memory_space<vmem>>, vector<4x256xbf16>,
    %c255_i32 = arith.constant 255 : i32
    %35 = tpu.dynamic_rotate %12 by %c255_i32 dim 1 : vector<4x256xf32>, i32 -> vector<4x256xf32>
    %36 = vector.broadcast %5 : vector<1x256xf32> to vector<4x256xf32>
    %37 = arith.mulf %35, %36 : vector<4x256xf32>
    %38 = arith.truncf %37 : vector<4x256xf32> to vector<4x256xbf16>
    %c20 = arith.constant 20 : index
    %c0_21 = arith.constant 0 : index
    %39 = vector.load %arg6[%c20, %c0_21] : memref<36x256xbf16, #tpu.memory_space<vmem>>, vector<4x256xbf16>
    tpu.vector_store %arg6[%c20, %c0_21], %38 {strides = array<i32>} : memref<36x256xbf16, #tpu.memory_space<vmem>>, vector<4x256xbf16>,
    %c241_i32 = arith.constant 241 : i32
    %40 = tpu.dynamic_rotate %12 by %c241_i32 dim 1 : vector<4x256xf32>, i32 -> vector<4x256xf32>
    %41 = vector.broadcast %6 : vector<1x256xf32> to vector<4x256xf32>
    %42 = arith.mulf %40, %41 : vector<4x256xf32>
    %43 = arith.truncf %42 : vector<4x256xf32> to vector<4x256xbf16>
    %c24 = arith.constant 24 : index
    %c0_22 = arith.constant 0 : index
    %44 = vector.load %arg6[%c24, %c0_22] : memref<36x256xbf16, #tpu.memory_space<vmem>>, vector<4x256xbf16>
    tpu.vector_store %arg6[%c24, %c0_22], %43 {strides = array<i32>} : memref<36x256xbf16, #tpu.memory_space<vmem>>, vector<4x256xbf16>,
    %c240_i32 = arith.constant 240 : i32
    %45 = tpu.dynamic_rotate %12 by %c240_i32 dim 1 : vector<4x256xf32>, i32 -> vector<4x256xf32>
    %46 = vector.broadcast %7 : vector<1x256xf32> to vector<4x256xf32>
    %47 = arith.mulf %45, %46 : vector<4x256xf32>
    %48 = arith.truncf %47 : vector<4x256xf32> to vector<4x256xbf16>
    %c28 = arith.constant 28 : index
    %c0_23 = arith.constant 0 : index
    %49 = vector.load %arg6[%c28, %c0_23] : memref<36x256xbf16, #tpu.memory_space<vmem>>, vector<4x256xbf16>
    tpu.vector_store %arg6[%c28, %c0_23], %48 {strides = array<i32>} : memref<36x256xbf16, #tpu.memory_space<vmem>>, vector<4x256xbf16>,
    %c239_i32 = arith.constant 239 : i32
    %50 = tpu.dynamic_rotate %12 by %c239_i32 dim 1 : vector<4x256xf32>, i32 -> vector<4x256xf32>
    %51 = vector.broadcast %8 : vector<1x256xf32> to vector<4x256xf32>
    %52 = arith.mulf %50, %51 : vector<4x256xf32>
    %53 = arith.truncf %52 : vector<4x256xf32> to vector<4x256xbf16>
    %c32 = arith.constant 32 : index
    %c0_24 = arith.constant 0 : index
    %54 = vector.load %arg6[%c32, %c0_24] : memref<36x256xbf16, #tpu.memory_space<vmem>>, vector<4x256xbf16>
    tpu.vector_store %arg6[%c32, %c0_24], %53 {strides = array<i32>} : memref<36x256xbf16, #tpu.memory_space<vmem>>, vector<4x256xbf16>,
    %c0_25 = arith.constant 0 : index
    %c0_26 = arith.constant 0 : index
    %55 = vector.load %arg6[%c0_25, %c0_26] : memref<36x256xbf16, #tpu.memory_space<vmem>>, vector<36x256xbf16>
    %cst_27 = arith.constant dense<0.000000e+00> : vector<4x256xf32>
    %56 = tpu.matmul %0, %55, %cst_27 {dimension_numbers = #tpu.dot_dimension_numbers<[1], [0], [0], [1], [0, 0, 1, 1], [], []>} : vector<4x36xbf16>, vector<36x256xbf16>, vector<4x256xf32> -> vector<4x256xf32>
    %c0_28 = arith.constant 0 : index
    %c0_29 = arith.constant 0 : index
    %c0_30 = arith.constant 0 : index
    %57 = vector.load %arg4[%c0_28, %c0_29, %c0_30] : memref<2x4x256xf32, #tpu.memory_space<vmem>>, vector<1x4x256xf32>
    %58 = vector.shape_cast %57 : vector<1x4x256xf32> to vector<4x256xf32>
    %59 = vector.shape_cast %56 : vector<4x256xf32> to vector<1x4x256xf32>
    tpu.vector_store %arg4[%c0_28, %c0_29, %c0_30], %59 {strides = array<i32>} : memref<2x4x256xf32, #tpu.memory_space<vmem>>, vector<1x4x256xf32>,
    %cst_31 = arith.constant dense<0.000000e+00> : vector<4xf32>
    %60 = vector.multi_reduction <add>, %56, %cst_31 [1] : vector<4x256xf32> to vector<4xf32>
    %61 = vector.shape_cast %60 : vector<4xf32> to vector<4x1xf32>
    %62 = arith.addf %9, %61 : vector<4x1xf32>
    %63 = arith.mulf %56, %56 : vector<4x256xf32>
    %cst_32 = arith.constant dense<0.000000e+00> : vector<4xf32>
    %64 = vector.multi_reduction <add>, %63, %cst_32 [1] : vector<4x256xf32> to vector<4xf32>
    %65 = vector.shape_cast %64 : vector<4xf32> to vector<4x1xf32>
    %66 = arith.addf %10, %65 : vector<4x1xf32>
    %c1_33 = arith.constant 1 : index
    %c0_34 = arith.constant 0 : index
    %c0_35 = arith.constant 0 : index
    %67 = vector.load %arg1[%c1_33, %c0_34, %c0_35] : memref<2x4x256xf32, #tpu.memory_space<vmem>>, vector<1x4x256xf32>
    %68 = vector.shape_cast %67 : vector<1x4x256xf32> to vector<4x256xf32>
    %c17_i32_36 = arith.constant 17 : i32
    %69 = tpu.dynamic_rotate %68 by %c17_i32_36 dim 1 : vector<4x256xf32>, i32 -> vector<4x256xf32>
    %70 = vector.broadcast %1 : vector<1x256xf32> to vector<4x256xf32>
    %71 = arith.mulf %69, %70 : vector<4x256xf32>
    %72 = arith.truncf %71 : vector<4x256xf32> to vector<4x256xbf16>
    %c0_37 = arith.constant 0 : index
    %c0_38 = arith.constant 0 : index
    %73 = vector.load %arg6[%c0_37, %c0_38] : memref<36x256xbf16, #tpu.memory_space<vmem>>, vector<4x256xbf16>
    tpu.vector_store %arg6[%c0_37, %c0_38], %72 {strides = array<i32>} : memref<36x256xbf16, #tpu.memory_space<vmem>>, vector<4x256xbf16>,
    %c16_i32_39 = arith.constant 16 : i32
    %74 = tpu.dynamic_rotate %68 by %c16_i32_39 dim 1 : vector<4x256xf32>, i32 -> vector<4x256xf32>
    %75 = vector.broadcast %2 : vector<1x256xf32> to vector<4x256xf32>
    %76 = arith.mulf %74, %75 : vector<4x256xf32>
    %77 = arith.truncf %76 : vector<4x256xf32> to vector<4x256xbf16>
    %c4_40 = arith.constant 4 : index
    %c0_41 = arith.constant 0 : index
    %78 = vector.load %arg6[%c4_40, %c0_41] : memref<36x256xbf16, #tpu.memory_space<vmem>>, vector<4x256xbf16>
    tpu.vector_store %arg6[%c4_40, %c0_41], %77 {strides = array<i32>} : memref<36x256xbf16, #tpu.memory_space<vmem>>, vector<4x256xbf16>,
    %c15_i32_42 = arith.constant 15 : i32
    %79 = tpu.dynamic_rotate %68 by %c15_i32_42 dim 1 : vector<4x256xf32>, i32 -> vector<4x256xf32>
    %80 = vector.broadcast %3 : vector<1x256xf32> to vector<4x256xf32>
    %81 = arith.mulf %79, %80 : vector<4x256xf32>
    %82 = arith.truncf %81 : vector<4x256xf32> to vector<4x256xbf16>
    %c8_43 = arith.constant 8 : index
    %c0_44 = arith.constant 0 : index
    %83 = vector.load %arg6[%c8_43, %c0_44] : memref<36x256xbf16, #tpu.memory_space<vmem>>, vector<4x256xbf16>
    tpu.vector_store %arg6[%c8_43, %c0_44], %82 {strides = array<i32>} : memref<36x256xbf16, #tpu.memory_space<vmem>>, vector<4x256xbf16>,
    %c1_i32_45 = arith.constant 1 : i32
    %84 = tpu.dynamic_rotate %68 by %c1_i32_45 dim 1 : vector<4x256xf32>, i32 -> vector<4x256xf32>
    %85 = vector.broadcast %4 : vector<1x256xf32> to vector<4x256xf32>
    %86 = arith.mulf %84, %85 : vector<4x256xf32>
    %87 = arith.truncf %86 : vector<4x256xf32> to vector<4x256xbf16>
    %c12_46 = arith.constant 12 : index
    %c0_47 = arith.constant 0 : index
    %88 = vector.load %arg6[%c12_46, %c0_47] : memref<36x256xbf16, #tpu.memory_space<vmem>>, vector<4x256xbf16>
    tpu.vector_store %arg6[%c12_46, %c0_47], %87 {strides = array<i32>} : memref<36x256xbf16, #tpu.memory_space<vmem>>, vector<4x256xbf16>,
    %89 = arith.truncf %68 : vector<4x256xf32> to vector<4x256xbf16>
    %c16_48 = arith.constant 16 : index
    %c0_49 = arith.constant 0 : index
    %90 = vector.load %arg6[%c16_48, %c0_49] : memref<36x256xbf16, #tpu.memory_space<vmem>>, vector<4x256xbf16>
    tpu.vector_store %arg6[%c16_48, %c0_49], %89 {strides = array<i32>} : memref<36x256xbf16, #tpu.memory_space<vmem>>, vector<4x256xbf16>,
    %c255_i32_50 = arith.constant 255 : i32
    %91 = tpu.dynamic_rotate %68 by %c255_i32_50 dim 1 : vector<4x256xf32>, i32 -> vector<4x256xf32>
    %92 = vector.broadcast %5 : vector<1x256xf32> to vector<4x256xf32>
    %93 = arith.mulf %91, %92 : vector<4x256xf32>
    %94 = arith.truncf %93 : vector<4x256xf32> to vector<4x256xbf16>
    %c20_51 = arith.constant 20 : index
    %c0_52 = arith.constant 0 : index
    %95 = vector.load %arg6[%c20_51, %c0_52] : memref<36x256xbf16, #tpu.memory_space<vmem>>, vector<4x256xbf16>
    tpu.vector_store %arg6[%c20_51, %c0_52], %94 {strides = array<i32>} : memref<36x256xbf16, #tpu.memory_space<vmem>>, vector<4x256xbf16>,
    %c241_i32_53 = arith.constant 241 : i32
    %96 = tpu.dynamic_rotate %68 by %c241_i32_53 dim 1 : vector<4x256xf32>, i32 -> vector<4x256xf32>
    %97 = vector.broadcast %6 : vector<1x256xf32> to vector<4x256xf32>
    %98 = arith.mulf %96, %97 : vector<4x256xf32>
    %99 = arith.truncf %98 : vector<4x256xf32> to vector<4x256xbf16>
    %c24_54 = arith.constant 24 : index
    %c0_55 = arith.constant 0 : index
    %100 = vector.load %arg6[%c24_54, %c0_55] : memref<36x256xbf16, #tpu.memory_space<vmem>>, vector<4x256xbf16>
    tpu.vector_store %arg6[%c24_54, %c0_55], %99 {strides = array<i32>} : memref<36x256xbf16, #tpu.memory_space<vmem>>, vector<4x256xbf16>,
    %c240_i32_56 = arith.constant 240 : i32
    %101 = tpu.dynamic_rotate %68 by %c240_i32_56 dim 1 : vector<4x256xf32>, i32 -> vector<4x256xf32>
    %102 = vector.broadcast %7 : vector<1x256xf32> to vector<4x256xf32>
    %103 = arith.mulf %101, %102 : vector<4x256xf32>
    %104 = arith.truncf %103 : vector<4x256xf32> to vector<4x256xbf16>
    %c28_57 = arith.constant 28 : index
    %c0_58 = arith.constant 0 : index
    %105 = vector.load %arg6[%c28_57, %c0_58] : memref<36x256xbf16, #tpu.memory_space<vmem>>, vector<4x256xbf16>
    tpu.vector_store %arg6[%c28_57, %c0_58], %104 {strides = array<i32>} : memref<36x256xbf16, #tpu.memory_space<vmem>>, vector<4x256xbf16>,
    %c239_i32_59 = arith.constant 239 : i32
    %106 = tpu.dynamic_rotate %68 by %c239_i32_59 dim 1 : vector<4x256xf32>, i32 -> vector<4x256xf32>
    %107 = vector.broadcast %8 : vector<1x256xf32> to vector<4x256xf32>
    %108 = arith.mulf %106, %107 : vector<4x256xf32>
    %109 = arith.truncf %108 : vector<4x256xf32> to vector<4x256xbf16>
    %c32_60 = arith.constant 32 : index
    %c0_61 = arith.constant 0 : index
    %110 = vector.load %arg6[%c32_60, %c0_61] : memref<36x256xbf16, #tpu.memory_space<vmem>>, vector<4x256xbf16>
    tpu.vector_store %arg6[%c32_60, %c0_61], %109 {strides = array<i32>} : memref<36x256xbf16, #tpu.memory_space<vmem>>, vector<4x256xbf16>,
    %c0_62 = arith.constant 0 : index
    %c0_63 = arith.constant 0 : index
    %111 = vector.load %arg6[%c0_62, %c0_63] : memref<36x256xbf16, #tpu.memory_space<vmem>>, vector<36x256xbf16>
    %cst_64 = arith.constant dense<0.000000e+00> : vector<4x256xf32>
    %112 = tpu.matmul %0, %111, %cst_64 {dimension_numbers = #tpu.dot_dimension_numbers<[1], [0], [0], [1], [0, 0, 1, 1], [], []>} : vector<4x36xbf16>, vector<36x256xbf16>, vector<4x256xf32> -> vector<4x256xf32>
    %c1_65 = arith.constant 1 : index
    %c0_66 = arith.constant 0 : index
    %c0_67 = arith.constant 0 : index
    %113 = vector.load %arg4[%c1_65, %c0_66, %c0_67] : memref<2x4x256xf32, #tpu.memory_space<vmem>>, vector<1x4x256xf32>
    %114 = vector.shape_cast %113 : vector<1x4x256xf32> to vector<4x256xf32>
    %115 = vector.shape_cast %112 : vector<4x256xf32> to vector<1x4x256xf32>
    tpu.vector_store %arg4[%c1_65, %c0_66, %c0_67], %115 {strides = array<i32>} : memref<2x4x256xf32, #tpu.memory_space<vmem>>, vector<1x4x256xf32>,
    %cst_68 = arith.constant dense<0.000000e+00> : vector<4xf32>
    %116 = vector.multi_reduction <add>, %112, %cst_68 [1] : vector<4x256xf32> to vector<4xf32>
    %117 = vector.shape_cast %116 : vector<4xf32> to vector<4x1xf32>
    %118 = arith.addf %62, %117 : vector<4x1xf32>
    %119 = arith.mulf %112, %112 : vector<4x256xf32>
    %cst_69 = arith.constant dense<0.000000e+00> : vector<4xf32>
    %120 = vector.multi_reduction <add>, %119, %cst_69 [1] : vector<4x256xf32> to vector<4xf32>
    %121 = vector.shape_cast %120 : vector<4xf32> to vector<4x1xf32>
    %122 = arith.addf %66, %121 : vector<4x1xf32>
    %123 = vector.shape_cast %118 : vector<4x1xf32> to vector<1x4x1xf32>
    %c0_70 = arith.constant 0 : index
    %c0_71 = arith.constant 0 : index
    %c0_72 = arith.constant 0 : index
    %124 = vector.load %arg5[%c0_70, %c0_71, %c0_72] : memref<1x4x2xf32, #tpu.memory_space<vmem>>, vector<1x4x1xf32>
    tpu.vector_store %arg5[%c0_70, %c0_71, %c0_72], %123 {strides = array<i32>} : memref<1x4x2xf32, #tpu.memory_space<vmem>>, vector<1x4x1xf32>,
    %125 = vector.shape_cast %122 : vector<4x1xf32> to vector<1x4x1xf32>
    %c0_73 = arith.constant 0 : index
    %c0_74 = arith.constant 0 : index
    %c1_75 = arith.constant 1 : index
    %126 = vector.load %arg5[%c0_73, %c0_74, %c1_75] : memref<1x4x2xf32, #tpu.memory_space<vmem>>, vector<1x4x1xf32>
    tpu.vector_store %arg5[%c0_73, %c0_74, %c1_75], %125 {strides = array<i32>} : memref<1x4x2xf32, #tpu.memory_space<vmem>>, vector<1x4x1xf32>,
    return
  }
  func.func @transform_0(%arg0: i32) -> (i32, i32, i32) {
    %c0_i32 = arith.constant 0 : i32
    %c0_i32_0 = arith.constant 0 : i32
    %c0_i32_1 = arith.constant 0 : i32
    return %arg0, %c0_i32, %c0_i32_0 : i32, i32, i32
  }
  func.func @transform_1(%arg0: i32) -> (i32, i32) {
    %c0_i32 = arith.constant 0 : i32
    %c0_i32_0 = arith.constant 0 : i32
    %c0_i32_1 = arith.constant 0 : i32
    return %c0_i32, %c0_i32_0 : i32, i32
  }
  func.func @transform_2(%arg0: i32) -> (i32, i32) {
    %c0_i32 = arith.constant 0 : i32
    %c0_i32_0 = arith.constant 0 : i32
    %c0_i32_1 = arith.constant 0 : i32
    return %c0_i32, %c0_i32_0 : i32, i32
  }
  func.func @transform_3(%arg0: i32) -> (i32, i32, i32) {
    %c0_i32 = arith.constant 0 : i32
    %c0_i32_0 = arith.constant 0 : i32
    %c0_i32_1 = arith.constant 0 : i32
    return %arg0, %c0_i32, %c0_i32_0 : i32, i32, i32
  }
  func.func @transform_4(%arg0: i32) -> (i32, i32, i32) {
    %c0_i32 = arith.constant 0 : i32
    %c0_i32_0 = arith.constant 0 : i32
    %c0_i32_1 = arith.constant 0 : i32
    return %arg0, %c0_i32, %c0_i32_0 : i32, i32, i32
  }
}

module attributes {stable_mosaic.version = 11 : i64} {
  func.func @kernel(%arg0: i32, %arg1: memref<2x4x256xf32, #tpu.memory_space<vmem>>, %arg2: memref<4x1xf32, #tpu.memory_space<vmem>>, %arg3: memref<4x1xf32, #tpu.memory_space<vmem>>, %arg4: memref<4x36xbf16, #tpu.memory_space<vmem>>, %arg5: memref<9x256xf32, #tpu.memory_space<vmem>>, %arg6: memref<2x4x256xf32, #tpu.memory_space<vmem>>, %arg7: memref<1x4x2xf32, #tpu.memory_space<vmem>>, %arg8: memref<36x256xbf16, #tpu.memory_space<vmem>>) attributes {dimension_semantics = [#tpu.dimension_semantics<parallel>], iteration_bounds = array<i64: 1>, scalar_prefetch = 0 : i64, scratch_operands = 1 : i64, tpu.core_type = #tpu.core_type<tc>, window_params = [{transform_indices = @transform_0, window_bounds = array<i64: 2, 4, 256>}, {pipeline_mode = #tpu.pipeline_mode<synchronous>, transform_indices = @transform_1, window_bounds = array<i64: 4, 1>}, {pipeline_mode = #tpu.pipeline_mode<synchronous>, transform_indices = @transform_2, window_bounds = array<i64: 4, 1>}, {pipeline_mode = #tpu.pipeline_mode<synchronous>, transform_indices = @transform_3, window_bounds = array<i64: 4, 36>}, {pipeline_mode = #tpu.pipeline_mode<synchronous>, transform_indices = @transform_4, window_bounds = array<i64: 9, 256>}, {transform_indices = @transform_5, window_bounds = array<i64: 2, 4, 256>}, {transform_indices = @transform_6, window_bounds = array<i64: 1, 4, 2>}]} {
    %c0 = arith.constant 0 : index
    %c0_0 = arith.constant 0 : index
    %0 = vector.load %arg4[%c0, %c0_0] : memref<4x36xbf16, #tpu.memory_space<vmem>>, vector<4x36xbf16>
    %c0_1 = arith.constant 0 : index
    %c0_2 = arith.constant 0 : index
    %1 = vector.load %arg5[%c0_1, %c0_2] : memref<9x256xf32, #tpu.memory_space<vmem>>, vector<1x256xf32>
    %c1 = arith.constant 1 : index
    %c0_3 = arith.constant 0 : index
    %2 = vector.load %arg5[%c1, %c0_3] : memref<9x256xf32, #tpu.memory_space<vmem>>, vector<1x256xf32>
    %c2 = arith.constant 2 : index
    %c0_4 = arith.constant 0 : index
    %3 = vector.load %arg5[%c2, %c0_4] : memref<9x256xf32, #tpu.memory_space<vmem>>, vector<1x256xf32>
    %c3 = arith.constant 3 : index
    %c0_5 = arith.constant 0 : index
    %4 = vector.load %arg5[%c3, %c0_5] : memref<9x256xf32, #tpu.memory_space<vmem>>, vector<1x256xf32>
    %c5 = arith.constant 5 : index
    %c0_6 = arith.constant 0 : index
    %5 = vector.load %arg5[%c5, %c0_6] : memref<9x256xf32, #tpu.memory_space<vmem>>, vector<1x256xf32>
    %c6 = arith.constant 6 : index
    %c0_7 = arith.constant 0 : index
    %6 = vector.load %arg5[%c6, %c0_7] : memref<9x256xf32, #tpu.memory_space<vmem>>, vector<1x256xf32>
    %c7 = arith.constant 7 : index
    %c0_8 = arith.constant 0 : index
    %7 = vector.load %arg5[%c7, %c0_8] : memref<9x256xf32, #tpu.memory_space<vmem>>, vector<1x256xf32>
    %c8 = arith.constant 8 : index
    %c0_9 = arith.constant 0 : index
    %8 = vector.load %arg5[%c8, %c0_9] : memref<9x256xf32, #tpu.memory_space<vmem>>, vector<1x256xf32>
    %c0_10 = arith.constant 0 : index
    %c0_11 = arith.constant 0 : index
    %9 = vector.load %arg2[%c0_10, %c0_11] : memref<4x1xf32, #tpu.memory_space<vmem>>, vector<4x1xf32>
    %c0_12 = arith.constant 0 : index
    %c0_13 = arith.constant 0 : index
    %10 = vector.load %arg3[%c0_12, %c0_13] : memref<4x1xf32, #tpu.memory_space<vmem>>, vector<4x1xf32>
    %cst = arith.constant 0.000000e+00 : f32
    %11 = vector.broadcast %cst : f32 to vector<4x1xf32>
    %cst_14 = arith.constant 0.000000e+00 : f32
    %12 = vector.broadcast %cst_14 : f32 to vector<4x1xf32>
    %c0_15 = arith.constant 0 : index
    %c0_16 = arith.constant 0 : index
    %c0_17 = arith.constant 0 : index
    %13 = vector.load %arg1[%c0_15, %c0_16, %c0_17] : memref<2x4x256xf32, #tpu.memory_space<vmem>>, vector<1x4x256xf32>
    %14 = vector.shape_cast %13 : vector<1x4x256xf32> to vector<4x256xf32>
    %15 = vector.broadcast %9 : vector<4x1xf32> to vector<4x256xf32>
    %16 = arith.mulf %14, %15 : vector<4x256xf32>
    %17 = vector.broadcast %10 : vector<4x1xf32> to vector<4x256xf32>
    %18 = arith.addf %16, %17 : vector<4x256xf32>
    %cst_18 = arith.constant 0.000000e+00 : f32
    %19 = vector.broadcast %cst_18 : f32 to vector<4x256xf32>
    %20 = arith.maximumf %18, %19 : vector<4x256xf32>
    %c17_i32 = arith.constant 17 : i32
    %21 = tpu.dynamic_rotate %20 by %c17_i32 dim 1 : vector<4x256xf32>, i32 -> vector<4x256xf32>
    %22 = vector.broadcast %1 : vector<1x256xf32> to vector<4x256xf32>
    %23 = arith.mulf %21, %22 : vector<4x256xf32>
    %24 = arith.truncf %23 : vector<4x256xf32> to vector<4x256xbf16>
    %c0_19 = arith.constant 0 : index
    %c0_20 = arith.constant 0 : index
    %25 = vector.load %arg8[%c0_19, %c0_20] : memref<36x256xbf16, #tpu.memory_space<vmem>>, vector<4x256xbf16>
    tpu.vector_store %arg8[%c0_19, %c0_20], %24 {strides = array<i32>} : memref<36x256xbf16, #tpu.memory_space<vmem>>, vector<4x256xbf16>,
    %c16_i32 = arith.constant 16 : i32
    %26 = tpu.dynamic_rotate %20 by %c16_i32 dim 1 : vector<4x256xf32>, i32 -> vector<4x256xf32>
    %27 = vector.broadcast %2 : vector<1x256xf32> to vector<4x256xf32>
    %28 = arith.mulf %26, %27 : vector<4x256xf32>
    %29 = arith.truncf %28 : vector<4x256xf32> to vector<4x256xbf16>
    %c4 = arith.constant 4 : index
    %c0_21 = arith.constant 0 : index
    %30 = vector.load %arg8[%c4, %c0_21] : memref<36x256xbf16, #tpu.memory_space<vmem>>, vector<4x256xbf16>
    tpu.vector_store %arg8[%c4, %c0_21], %29 {strides = array<i32>} : memref<36x256xbf16, #tpu.memory_space<vmem>>, vector<4x256xbf16>,
    %c15_i32 = arith.constant 15 : i32
    %31 = tpu.dynamic_rotate %20 by %c15_i32 dim 1 : vector<4x256xf32>, i32 -> vector<4x256xf32>
    %32 = vector.broadcast %3 : vector<1x256xf32> to vector<4x256xf32>
    %33 = arith.mulf %31, %32 : vector<4x256xf32>
    %34 = arith.truncf %33 : vector<4x256xf32> to vector<4x256xbf16>
    %c8_22 = arith.constant 8 : index
    %c0_23 = arith.constant 0 : index
    %35 = vector.load %arg8[%c8_22, %c0_23] : memref<36x256xbf16, #tpu.memory_space<vmem>>, vector<4x256xbf16>
    tpu.vector_store %arg8[%c8_22, %c0_23], %34 {strides = array<i32>} : memref<36x256xbf16, #tpu.memory_space<vmem>>, vector<4x256xbf16>,
    %c1_i32 = arith.constant 1 : i32
    %36 = tpu.dynamic_rotate %20 by %c1_i32 dim 1 : vector<4x256xf32>, i32 -> vector<4x256xf32>
    %37 = vector.broadcast %4 : vector<1x256xf32> to vector<4x256xf32>
    %38 = arith.mulf %36, %37 : vector<4x256xf32>
    %39 = arith.truncf %38 : vector<4x256xf32> to vector<4x256xbf16>
    %c12 = arith.constant 12 : index
    %c0_24 = arith.constant 0 : index
    %40 = vector.load %arg8[%c12, %c0_24] : memref<36x256xbf16, #tpu.memory_space<vmem>>, vector<4x256xbf16>
    tpu.vector_store %arg8[%c12, %c0_24], %39 {strides = array<i32>} : memref<36x256xbf16, #tpu.memory_space<vmem>>, vector<4x256xbf16>,
    %41 = arith.truncf %20 : vector<4x256xf32> to vector<4x256xbf16>
    %c16 = arith.constant 16 : index
    %c0_25 = arith.constant 0 : index
    %42 = vector.load %arg8[%c16, %c0_25] : memref<36x256xbf16, #tpu.memory_space<vmem>>, vector<4x256xbf16>
    tpu.vector_store %arg8[%c16, %c0_25], %41 {strides = array<i32>} : memref<36x256xbf16, #tpu.memory_space<vmem>>, vector<4x256xbf16>,
    %c255_i32 = arith.constant 255 : i32
    %43 = tpu.dynamic_rotate %20 by %c255_i32 dim 1 : vector<4x256xf32>, i32 -> vector<4x256xf32>
    %44 = vector.broadcast %5 : vector<1x256xf32> to vector<4x256xf32>
    %45 = arith.mulf %43, %44 : vector<4x256xf32>
    %46 = arith.truncf %45 : vector<4x256xf32> to vector<4x256xbf16>
    %c20 = arith.constant 20 : index
    %c0_26 = arith.constant 0 : index
    %47 = vector.load %arg8[%c20, %c0_26] : memref<36x256xbf16, #tpu.memory_space<vmem>>, vector<4x256xbf16>
    tpu.vector_store %arg8[%c20, %c0_26], %46 {strides = array<i32>} : memref<36x256xbf16, #tpu.memory_space<vmem>>, vector<4x256xbf16>,
    %c241_i32 = arith.constant 241 : i32
    %48 = tpu.dynamic_rotate %20 by %c241_i32 dim 1 : vector<4x256xf32>, i32 -> vector<4x256xf32>
    %49 = vector.broadcast %6 : vector<1x256xf32> to vector<4x256xf32>
    %50 = arith.mulf %48, %49 : vector<4x256xf32>
    %51 = arith.truncf %50 : vector<4x256xf32> to vector<4x256xbf16>
    %c24 = arith.constant 24 : index
    %c0_27 = arith.constant 0 : index
    %52 = vector.load %arg8[%c24, %c0_27] : memref<36x256xbf16, #tpu.memory_space<vmem>>, vector<4x256xbf16>
    tpu.vector_store %arg8[%c24, %c0_27], %51 {strides = array<i32>} : memref<36x256xbf16, #tpu.memory_space<vmem>>, vector<4x256xbf16>,
    %c240_i32 = arith.constant 240 : i32
    %53 = tpu.dynamic_rotate %20 by %c240_i32 dim 1 : vector<4x256xf32>, i32 -> vector<4x256xf32>
    %54 = vector.broadcast %7 : vector<1x256xf32> to vector<4x256xf32>
    %55 = arith.mulf %53, %54 : vector<4x256xf32>
    %56 = arith.truncf %55 : vector<4x256xf32> to vector<4x256xbf16>
    %c28 = arith.constant 28 : index
    %c0_28 = arith.constant 0 : index
    %57 = vector.load %arg8[%c28, %c0_28] : memref<36x256xbf16, #tpu.memory_space<vmem>>, vector<4x256xbf16>
    tpu.vector_store %arg8[%c28, %c0_28], %56 {strides = array<i32>} : memref<36x256xbf16, #tpu.memory_space<vmem>>, vector<4x256xbf16>,
    %c239_i32 = arith.constant 239 : i32
    %58 = tpu.dynamic_rotate %20 by %c239_i32 dim 1 : vector<4x256xf32>, i32 -> vector<4x256xf32>
    %59 = vector.broadcast %8 : vector<1x256xf32> to vector<4x256xf32>
    %60 = arith.mulf %58, %59 : vector<4x256xf32>
    %61 = arith.truncf %60 : vector<4x256xf32> to vector<4x256xbf16>
    %c32 = arith.constant 32 : index
    %c0_29 = arith.constant 0 : index
    %62 = vector.load %arg8[%c32, %c0_29] : memref<36x256xbf16, #tpu.memory_space<vmem>>, vector<4x256xbf16>
    tpu.vector_store %arg8[%c32, %c0_29], %61 {strides = array<i32>} : memref<36x256xbf16, #tpu.memory_space<vmem>>, vector<4x256xbf16>,
    %c0_30 = arith.constant 0 : index
    %c0_31 = arith.constant 0 : index
    %63 = vector.load %arg8[%c0_30, %c0_31] : memref<36x256xbf16, #tpu.memory_space<vmem>>, vector<36x256xbf16>
    %cst_32 = arith.constant dense<0.000000e+00> : vector<4x256xf32>
    %64 = tpu.matmul %0, %63, %cst_32 {dimension_numbers = #tpu.dot_dimension_numbers<[1], [0], [0], [1], [0, 0, 1, 1], [], []>} : vector<4x36xbf16>, vector<36x256xbf16>, vector<4x256xf32> -> vector<4x256xf32>
    %c0_33 = arith.constant 0 : index
    %c0_34 = arith.constant 0 : index
    %c0_35 = arith.constant 0 : index
    %65 = vector.load %arg6[%c0_33, %c0_34, %c0_35] : memref<2x4x256xf32, #tpu.memory_space<vmem>>, vector<1x4x256xf32>
    %66 = vector.shape_cast %65 : vector<1x4x256xf32> to vector<4x256xf32>
    %67 = vector.shape_cast %64 : vector<4x256xf32> to vector<1x4x256xf32>
    tpu.vector_store %arg6[%c0_33, %c0_34, %c0_35], %67 {strides = array<i32>} : memref<2x4x256xf32, #tpu.memory_space<vmem>>, vector<1x4x256xf32>,
    %cst_36 = arith.constant dense<0.000000e+00> : vector<4xf32>
    %68 = vector.multi_reduction <add>, %64, %cst_36 [1] : vector<4x256xf32> to vector<4xf32>
    %69 = vector.shape_cast %68 : vector<4xf32> to vector<4x1xf32>
    %70 = arith.addf %11, %69 : vector<4x1xf32>
    %71 = arith.mulf %64, %64 : vector<4x256xf32>
    %cst_37 = arith.constant dense<0.000000e+00> : vector<4xf32>
    %72 = vector.multi_reduction <add>, %71, %cst_37 [1] : vector<4x256xf32> to vector<4xf32>
    %73 = vector.shape_cast %72 : vector<4xf32> to vector<4x1xf32>
    %74 = arith.addf %12, %73 : vector<4x1xf32>
    %c1_38 = arith.constant 1 : index
    %c0_39 = arith.constant 0 : index
    %c0_40 = arith.constant 0 : index
    %75 = vector.load %arg1[%c1_38, %c0_39, %c0_40] : memref<2x4x256xf32, #tpu.memory_space<vmem>>, vector<1x4x256xf32>
    %76 = vector.shape_cast %75 : vector<1x4x256xf32> to vector<4x256xf32>
    %77 = vector.broadcast %9 : vector<4x1xf32> to vector<4x256xf32>
    %78 = arith.mulf %76, %77 : vector<4x256xf32>
    %79 = vector.broadcast %10 : vector<4x1xf32> to vector<4x256xf32>
    %80 = arith.addf %78, %79 : vector<4x256xf32>
    %cst_41 = arith.constant 0.000000e+00 : f32
    %81 = vector.broadcast %cst_41 : f32 to vector<4x256xf32>
    %82 = arith.maximumf %80, %81 : vector<4x256xf32>
    %c17_i32_42 = arith.constant 17 : i32
    %83 = tpu.dynamic_rotate %82 by %c17_i32_42 dim 1 : vector<4x256xf32>, i32 -> vector<4x256xf32>
    %84 = vector.broadcast %1 : vector<1x256xf32> to vector<4x256xf32>
    %85 = arith.mulf %83, %84 : vector<4x256xf32>
    %86 = arith.truncf %85 : vector<4x256xf32> to vector<4x256xbf16>
    %c0_43 = arith.constant 0 : index
    %c0_44 = arith.constant 0 : index
    %87 = vector.load %arg8[%c0_43, %c0_44] : memref<36x256xbf16, #tpu.memory_space<vmem>>, vector<4x256xbf16>
    tpu.vector_store %arg8[%c0_43, %c0_44], %86 {strides = array<i32>} : memref<36x256xbf16, #tpu.memory_space<vmem>>, vector<4x256xbf16>,
    %c16_i32_45 = arith.constant 16 : i32
    %88 = tpu.dynamic_rotate %82 by %c16_i32_45 dim 1 : vector<4x256xf32>, i32 -> vector<4x256xf32>
    %89 = vector.broadcast %2 : vector<1x256xf32> to vector<4x256xf32>
    %90 = arith.mulf %88, %89 : vector<4x256xf32>
    %91 = arith.truncf %90 : vector<4x256xf32> to vector<4x256xbf16>
    %c4_46 = arith.constant 4 : index
    %c0_47 = arith.constant 0 : index
    %92 = vector.load %arg8[%c4_46, %c0_47] : memref<36x256xbf16, #tpu.memory_space<vmem>>, vector<4x256xbf16>
    tpu.vector_store %arg8[%c4_46, %c0_47], %91 {strides = array<i32>} : memref<36x256xbf16, #tpu.memory_space<vmem>>, vector<4x256xbf16>,
    %c15_i32_48 = arith.constant 15 : i32
    %93 = tpu.dynamic_rotate %82 by %c15_i32_48 dim 1 : vector<4x256xf32>, i32 -> vector<4x256xf32>
    %94 = vector.broadcast %3 : vector<1x256xf32> to vector<4x256xf32>
    %95 = arith.mulf %93, %94 : vector<4x256xf32>
    %96 = arith.truncf %95 : vector<4x256xf32> to vector<4x256xbf16>
    %c8_49 = arith.constant 8 : index
    %c0_50 = arith.constant 0 : index
    %97 = vector.load %arg8[%c8_49, %c0_50] : memref<36x256xbf16, #tpu.memory_space<vmem>>, vector<4x256xbf16>
    tpu.vector_store %arg8[%c8_49, %c0_50], %96 {strides = array<i32>} : memref<36x256xbf16, #tpu.memory_space<vmem>>, vector<4x256xbf16>,
    %c1_i32_51 = arith.constant 1 : i32
    %98 = tpu.dynamic_rotate %82 by %c1_i32_51 dim 1 : vector<4x256xf32>, i32 -> vector<4x256xf32>
    %99 = vector.broadcast %4 : vector<1x256xf32> to vector<4x256xf32>
    %100 = arith.mulf %98, %99 : vector<4x256xf32>
    %101 = arith.truncf %100 : vector<4x256xf32> to vector<4x256xbf16>
    %c12_52 = arith.constant 12 : index
    %c0_53 = arith.constant 0 : index
    %102 = vector.load %arg8[%c12_52, %c0_53] : memref<36x256xbf16, #tpu.memory_space<vmem>>, vector<4x256xbf16>
    tpu.vector_store %arg8[%c12_52, %c0_53], %101 {strides = array<i32>} : memref<36x256xbf16, #tpu.memory_space<vmem>>, vector<4x256xbf16>,
    %103 = arith.truncf %82 : vector<4x256xf32> to vector<4x256xbf16>
    %c16_54 = arith.constant 16 : index
    %c0_55 = arith.constant 0 : index
    %104 = vector.load %arg8[%c16_54, %c0_55] : memref<36x256xbf16, #tpu.memory_space<vmem>>, vector<4x256xbf16>
    tpu.vector_store %arg8[%c16_54, %c0_55], %103 {strides = array<i32>} : memref<36x256xbf16, #tpu.memory_space<vmem>>, vector<4x256xbf16>,
    %c255_i32_56 = arith.constant 255 : i32
    %105 = tpu.dynamic_rotate %82 by %c255_i32_56 dim 1 : vector<4x256xf32>, i32 -> vector<4x256xf32>
    %106 = vector.broadcast %5 : vector<1x256xf32> to vector<4x256xf32>
    %107 = arith.mulf %105, %106 : vector<4x256xf32>
    %108 = arith.truncf %107 : vector<4x256xf32> to vector<4x256xbf16>
    %c20_57 = arith.constant 20 : index
    %c0_58 = arith.constant 0 : index
    %109 = vector.load %arg8[%c20_57, %c0_58] : memref<36x256xbf16, #tpu.memory_space<vmem>>, vector<4x256xbf16>
    tpu.vector_store %arg8[%c20_57, %c0_58], %108 {strides = array<i32>} : memref<36x256xbf16, #tpu.memory_space<vmem>>, vector<4x256xbf16>,
    %c241_i32_59 = arith.constant 241 : i32
    %110 = tpu.dynamic_rotate %82 by %c241_i32_59 dim 1 : vector<4x256xf32>, i32 -> vector<4x256xf32>
    %111 = vector.broadcast %6 : vector<1x256xf32> to vector<4x256xf32>
    %112 = arith.mulf %110, %111 : vector<4x256xf32>
    %113 = arith.truncf %112 : vector<4x256xf32> to vector<4x256xbf16>
    %c24_60 = arith.constant 24 : index
    %c0_61 = arith.constant 0 : index
    %114 = vector.load %arg8[%c24_60, %c0_61] : memref<36x256xbf16, #tpu.memory_space<vmem>>, vector<4x256xbf16>
    tpu.vector_store %arg8[%c24_60, %c0_61], %113 {strides = array<i32>} : memref<36x256xbf16, #tpu.memory_space<vmem>>, vector<4x256xbf16>,
    %c240_i32_62 = arith.constant 240 : i32
    %115 = tpu.dynamic_rotate %82 by %c240_i32_62 dim 1 : vector<4x256xf32>, i32 -> vector<4x256xf32>
    %116 = vector.broadcast %7 : vector<1x256xf32> to vector<4x256xf32>
    %117 = arith.mulf %115, %116 : vector<4x256xf32>
    %118 = arith.truncf %117 : vector<4x256xf32> to vector<4x256xbf16>
    %c28_63 = arith.constant 28 : index
    %c0_64 = arith.constant 0 : index
    %119 = vector.load %arg8[%c28_63, %c0_64] : memref<36x256xbf16, #tpu.memory_space<vmem>>, vector<4x256xbf16>
    tpu.vector_store %arg8[%c28_63, %c0_64], %118 {strides = array<i32>} : memref<36x256xbf16, #tpu.memory_space<vmem>>, vector<4x256xbf16>,
    %c239_i32_65 = arith.constant 239 : i32
    %120 = tpu.dynamic_rotate %82 by %c239_i32_65 dim 1 : vector<4x256xf32>, i32 -> vector<4x256xf32>
    %121 = vector.broadcast %8 : vector<1x256xf32> to vector<4x256xf32>
    %122 = arith.mulf %120, %121 : vector<4x256xf32>
    %123 = arith.truncf %122 : vector<4x256xf32> to vector<4x256xbf16>
    %c32_66 = arith.constant 32 : index
    %c0_67 = arith.constant 0 : index
    %124 = vector.load %arg8[%c32_66, %c0_67] : memref<36x256xbf16, #tpu.memory_space<vmem>>, vector<4x256xbf16>
    tpu.vector_store %arg8[%c32_66, %c0_67], %123 {strides = array<i32>} : memref<36x256xbf16, #tpu.memory_space<vmem>>, vector<4x256xbf16>,
    %c0_68 = arith.constant 0 : index
    %c0_69 = arith.constant 0 : index
    %125 = vector.load %arg8[%c0_68, %c0_69] : memref<36x256xbf16, #tpu.memory_space<vmem>>, vector<36x256xbf16>
    %cst_70 = arith.constant dense<0.000000e+00> : vector<4x256xf32>
    %126 = tpu.matmul %0, %125, %cst_70 {dimension_numbers = #tpu.dot_dimension_numbers<[1], [0], [0], [1], [0, 0, 1, 1], [], []>} : vector<4x36xbf16>, vector<36x256xbf16>, vector<4x256xf32> -> vector<4x256xf32>
    %c1_71 = arith.constant 1 : index
    %c0_72 = arith.constant 0 : index
    %c0_73 = arith.constant 0 : index
    %127 = vector.load %arg6[%c1_71, %c0_72, %c0_73] : memref<2x4x256xf32, #tpu.memory_space<vmem>>, vector<1x4x256xf32>
    %128 = vector.shape_cast %127 : vector<1x4x256xf32> to vector<4x256xf32>
    %129 = vector.shape_cast %126 : vector<4x256xf32> to vector<1x4x256xf32>
    tpu.vector_store %arg6[%c1_71, %c0_72, %c0_73], %129 {strides = array<i32>} : memref<2x4x256xf32, #tpu.memory_space<vmem>>, vector<1x4x256xf32>,
    %cst_74 = arith.constant dense<0.000000e+00> : vector<4xf32>
    %130 = vector.multi_reduction <add>, %126, %cst_74 [1] : vector<4x256xf32> to vector<4xf32>
    %131 = vector.shape_cast %130 : vector<4xf32> to vector<4x1xf32>
    %132 = arith.addf %70, %131 : vector<4x1xf32>
    %133 = arith.mulf %126, %126 : vector<4x256xf32>
    %cst_75 = arith.constant dense<0.000000e+00> : vector<4xf32>
    %134 = vector.multi_reduction <add>, %133, %cst_75 [1] : vector<4x256xf32> to vector<4xf32>
    %135 = vector.shape_cast %134 : vector<4xf32> to vector<4x1xf32>
    %136 = arith.addf %74, %135 : vector<4x1xf32>
    %137 = vector.shape_cast %132 : vector<4x1xf32> to vector<1x4x1xf32>
    %c0_76 = arith.constant 0 : index
    %c0_77 = arith.constant 0 : index
    %c0_78 = arith.constant 0 : index
    %138 = vector.load %arg7[%c0_76, %c0_77, %c0_78] : memref<1x4x2xf32, #tpu.memory_space<vmem>>, vector<1x4x1xf32>
    tpu.vector_store %arg7[%c0_76, %c0_77, %c0_78], %137 {strides = array<i32>} : memref<1x4x2xf32, #tpu.memory_space<vmem>>, vector<1x4x1xf32>,
    %139 = vector.shape_cast %136 : vector<4x1xf32> to vector<1x4x1xf32>
    %c0_79 = arith.constant 0 : index
    %c0_80 = arith.constant 0 : index
    %c1_81 = arith.constant 1 : index
    %140 = vector.load %arg7[%c0_79, %c0_80, %c1_81] : memref<1x4x2xf32, #tpu.memory_space<vmem>>, vector<1x4x1xf32>
    tpu.vector_store %arg7[%c0_79, %c0_80, %c1_81], %139 {strides = array<i32>} : memref<1x4x2xf32, #tpu.memory_space<vmem>>, vector<1x4x1xf32>,
    return
  }
  func.func @transform_0(%arg0: i32) -> (i32, i32, i32) {
    %c0_i32 = arith.constant 0 : i32
    %c0_i32_0 = arith.constant 0 : i32
    %c0_i32_1 = arith.constant 0 : i32
    return %arg0, %c0_i32, %c0_i32_0 : i32, i32, i32
  }
  func.func @transform_1(%arg0: i32) -> (i32, i32) {
    %c0_i32 = arith.constant 0 : i32
    %c0_i32_0 = arith.constant 0 : i32
    %c0_i32_1 = arith.constant 0 : i32
    return %c0_i32, %c0_i32_0 : i32, i32
  }
  func.func @transform_2(%arg0: i32) -> (i32, i32) {
    %c0_i32 = arith.constant 0 : i32
    %c0_i32_0 = arith.constant 0 : i32
    %c0_i32_1 = arith.constant 0 : i32
    return %c0_i32, %c0_i32_0 : i32, i32
  }
  func.func @transform_3(%arg0: i32) -> (i32, i32) {
    %c0_i32 = arith.constant 0 : i32
    %c0_i32_0 = arith.constant 0 : i32
    %c0_i32_1 = arith.constant 0 : i32
    return %c0_i32, %c0_i32_0 : i32, i32
  }
  func.func @transform_4(%arg0: i32) -> (i32, i32) {
    %c0_i32 = arith.constant 0 : i32
    %c0_i32_0 = arith.constant 0 : i32
    %c0_i32_1 = arith.constant 0 : i32
    return %c0_i32, %c0_i32_0 : i32, i32
  }
  func.func @transform_5(%arg0: i32) -> (i32, i32, i32) {
    %c0_i32 = arith.constant 0 : i32
    %c0_i32_0 = arith.constant 0 : i32
    %c0_i32_1 = arith.constant 0 : i32
    return %arg0, %c0_i32, %c0_i32_0 : i32, i32, i32
  }
  func.func @transform_6(%arg0: i32) -> (i32, i32, i32) {
    %c0_i32 = arith.constant 0 : i32
    %c0_i32_0 = arith.constant 0 : i32
    %c0_i32_1 = arith.constant 0 : i32
    return %arg0, %c0_i32, %c0_i32_0 : i32, i32, i32
  }
}

module attributes {stable_mosaic.version = 11 : i64} {
  func.func @_epilogue_kernel(%arg0: i32, %arg1: memref<2x4x256xf32, #tpu.memory_space<vmem>>, %arg2: memref<2x4x256xf32, #tpu.memory_space<vmem>>, %arg3: memref<4x1xf32, #tpu.memory_space<vmem>>, %arg4: memref<4x1xf32, #tpu.memory_space<vmem>>, %arg5: memref<2x4x256xf32, #tpu.memory_space<vmem>>) attributes {dimension_semantics = [#tpu.dimension_semantics<parallel>], iteration_bounds = array<i64: 1>, scalar_prefetch = 0 : i64, scratch_operands = 0 : i64, tpu.core_type = #tpu.core_type<tc>, window_params = [{transform_indices = @transform_0, window_bounds = array<i64: 2, 4, 256>}, {transform_indices = @transform_1, window_bounds = array<i64: 2, 4, 256>}, {pipeline_mode = #tpu.pipeline_mode<synchronous>, transform_indices = @transform_2, window_bounds = array<i64: 4, 1>}, {pipeline_mode = #tpu.pipeline_mode<synchronous>, transform_indices = @transform_3, window_bounds = array<i64: 4, 1>}, {transform_indices = @transform_4, window_bounds = array<i64: 2, 4, 256>}]} {
    %c0 = arith.constant 0 : index
    %c0_0 = arith.constant 0 : index
    %c0_1 = arith.constant 0 : index
    %0 = vector.load %arg1[%c0, %c0_0, %c0_1] : memref<2x4x256xf32, #tpu.memory_space<vmem>>, vector<2x4x256xf32>
    %c0_2 = arith.constant 0 : index
    %c0_3 = arith.constant 0 : index
    %1 = vector.load %arg3[%c0_2, %c0_3] : memref<4x1xf32, #tpu.memory_space<vmem>>, vector<4x1xf32>
    %2 = vector.shape_cast %1 : vector<4x1xf32> to vector<1x4x1xf32>
    %3 = vector.broadcast %2 : vector<1x4x1xf32> to vector<2x4x256xf32>
    %4 = arith.mulf %0, %3 : vector<2x4x256xf32>
    %c0_4 = arith.constant 0 : index
    %c0_5 = arith.constant 0 : index
    %5 = vector.load %arg4[%c0_4, %c0_5] : memref<4x1xf32, #tpu.memory_space<vmem>>, vector<4x1xf32>
    %6 = vector.shape_cast %5 : vector<4x1xf32> to vector<1x4x1xf32>
    %7 = vector.broadcast %6 : vector<1x4x1xf32> to vector<2x4x256xf32>
    %8 = arith.addf %4, %7 : vector<2x4x256xf32>
    %c0_6 = arith.constant 0 : index
    %c0_7 = arith.constant 0 : index
    %c0_8 = arith.constant 0 : index
    %9 = vector.load %arg2[%c0_6, %c0_7, %c0_8] : memref<2x4x256xf32, #tpu.memory_space<vmem>>, vector<2x4x256xf32>
    %10 = arith.addf %8, %9 : vector<2x4x256xf32>
    %cst = arith.constant 0.000000e+00 : f32
    %11 = vector.broadcast %cst : f32 to vector<2x4x256xf32>
    %12 = arith.maximumf %10, %11 : vector<2x4x256xf32>
    %c0_9 = arith.constant 0 : index
    %c0_10 = arith.constant 0 : index
    %c0_11 = arith.constant 0 : index
    %13 = vector.load %arg5[%c0_9, %c0_10, %c0_11] : memref<2x4x256xf32, #tpu.memory_space<vmem>>, vector<2x4x256xf32>
    tpu.vector_store %arg5[%c0_9, %c0_10, %c0_11], %12 {strides = array<i32>} : memref<2x4x256xf32, #tpu.memory_space<vmem>>, vector<2x4x256xf32>,
    return
  }
  func.func @transform_0(%arg0: i32) -> (i32, i32, i32) {
    %c0_i32 = arith.constant 0 : i32
    %c0_i32_0 = arith.constant 0 : i32
    %c0_i32_1 = arith.constant 0 : i32
    return %arg0, %c0_i32, %c0_i32_0 : i32, i32, i32
  }
  func.func @transform_1(%arg0: i32) -> (i32, i32, i32) {
    %c0_i32 = arith.constant 0 : i32
    %c0_i32_0 = arith.constant 0 : i32
    %c0_i32_1 = arith.constant 0 : i32
    return %arg0, %c0_i32, %c0_i32_0 : i32, i32, i32
  }
  func.func @transform_2(%arg0: i32) -> (i32, i32) {
    %c0_i32 = arith.constant 0 : i32
    %c0_i32_0 = arith.constant 0 : i32
    %c0_i32_1 = arith.constant 0 : i32
    return %c0_i32, %c0_i32_0 : i32, i32
  }
  func.func @transform_3(%arg0: i32) -> (i32, i32) {
    %c0_i32 = arith.constant 0 : i32
    %c0_i32_0 = arith.constant 0 : i32
    %c0_i32_1 = arith.constant 0 : i32
    return %c0_i32, %c0_i32_0 : i32, i32
  }
  func.func @transform_4(%arg0: i32) -> (i32, i32, i32) {
    %c0_i32 = arith.constant 0 : i32
    %c0_i32_0 = arith.constant 0 : i32
    %c0_i32_1 = arith.constant 0 : i32
    return %arg0, %c0_i32, %c0_i32_0 : i32, i32, i32
  }
}

</mosaic_0001>

<bundles_post_ra>
// kernel: basic_block_forward.5
= control target key start
LH: loop header
LB: loop body
LE: loop exit
PB: predicated region body
PF: predicated region fallthrough
CT: control target
= control target key end

     0   :  { %v58_v0 = vmov 0   ;;  %v59_v3 = vmov 839922192   ;;  %s109_s2 = inlined_call_operand.vmem [shape: f32[4,1], index: 2, kind: input, shape index: {}]   ;;  %s110_s3 = inlined_call_operand.vmem [shape: f32[4,1], index: 3, kind: input, shape index: {}]   ;;  %s111_s0 = inlined_call_operand.vmem [shape: f32[2,4,256], index: 0, kind: input, shape index: {}, may-alias: {0,4}]   ;;  %s112_s1 = inlined_call_operand.vmem [shape: f32[2,4,256], index: 1, kind: input, shape index: {}]   ;;  %s113_s4 = inlined_call_operand.vmem [shape: f32[2,4,256], index: 4, kind: output, shape index: {}, may-alias: {0,4}]  }
   0x1   :  { %57 = vset.pattern.permute.xlu0 %v58_v0  ;;  %v19_v1 = vld [vmem:[%s109_s2] sm:$0xf]  ;;  %v25_v4 = vunpack.c.l.s4 %v59_v3  ;;  %v18_v9 = vld [vmem:[%s111_s0 + $0x8] sm:$0xff] }
   0x2   :  { %22 = vperm.xlu0 %57, %v19_v1   ;;  %v31_v2 = vld [vmem:[%s110_s3] sm:$0xf]  ;;  %v44_v15 = vld [vmem:[%s112_s1 + $0x8] sm:$0xff] }
   0x3   :  { %v26_v6 = vunpack.c.0.s8 %v25_v4  ;;  %v17_v8 = vld [vmem:[%s111_s0] sm:$0xff] }
   0x4   :  { %v43_v14 = vld [vmem:[%s112_s1] sm:$0xff] }
   0xa   :  { %34 = vperm.xlu0 %57, %v31_v2  }
  0x74   :  { %v23_v5 = vpop.permute.xlu0 %22 }
  0x75   :  { %v27_v7 = vperm.slane %v23_v5, %v26_v6 }
  0x77   :  { %v29_v11 = vmul.f32 %v27_v7, %v17_v8  ;;  %v30_v12 = vmul.f32 %v27_v7, %v18_v9 }
  0x7c   :  { %v35_v10 = vpop.permute.xlu0 %34 }
  0x7d   :  { %v39_v13 = vperm.slane %v35_v10, %v26_v6 }
  0x7f   :  { %v41_v16 = vadd.f32 %v39_v13, %v29_v11  ;;  %v42_v17 = vadd.f32 %v39_v13, %v30_v12 }
  0x81   :  { %v45_v18 = vadd.f32 %v43_v14, %v41_v16  ;;  %v46_v19 = vadd.f32 %v44_v15, %v42_v17 }
  0x83   :  { %v47_v20 = vmax.f32 %v45_v18, 0.0  ;;  %v48_v21 = vmax.f32 %v46_v19, 0.0 }
  0x85   :  { %49 = vst [vmem:[%s113_s4] sm:$0xff] %v47_v20 }
  0x86   :  { %50 = vst [vmem:[%s113_s4 + $0x8] sm:$0xff] %v48_v21 }

// kernel: basic_block_forward.3
= control target key start
LH: loop header
LB: loop body
LE: loop exit
PB: predicated region body
PF: predicated region fallthrough
CT: control target
= control target key end

     0   :  { %s610_s17 = smov 17   ;;  %s611_s18 = smov 16   ;;  %v44_v35 = vlaneseq  ;;  %vm258_vm8 = vcmask 1041408   ;;  %vm254_vm9 = vcmask 293888   ;;  %vm294_vm10 = vcmask 1043456   ;;  %s938_s0 = inlined_call_operand.vmem [shape: f32[2,4,256], index: 0, kind: input, shape index: {}]   ;;  %s939_s2 = inlined_call_operand.vmem [shape: f32[9,256], index: 2, kind: input, shape index: {}]   ;;  %s940_s1 = inlined_call_operand.vmem [shape: bf16[4,36], index: 1, kind: input, shape index: {}]   ;;  %s941_s3 = inlined_call_operand.vmem [shape: f32[2,4,256], index: 3, kind: output, shape index: {0}]   ;;  %s942_s4 = inlined_call_operand.vmem [shape: f32[1,4,2], index: 4, kind: output, shape index: {1}]  }
   0x1   :  { %v33_v0 = vld [vmem:[%s938_s0] sm:$0xff]  ;;  %s612_s19 = smov 15   ;;  %s613_s20 = smov 1   ;;  %v574_v17 = vld [vmem:[%s938_s0 + $0x8] sm:$0xff]  ;;  %vm537_vm11 = vcmask 3072   ;;  %vm539_vm12 = vcmask 11272  }
   0x2   :  { %35 = vst [vmem:[#allocation1] ss:$2 sm:$0xff] %v33_v0  ;;  %s614_s21 = smov 127   ;;  %s615_s22 = smov 113   ;;  %v697_v39 = vand.u32 127, %v44_v35 }
   0x3   :  { %s616_s23 = smov 112   ;;  %s617_s26 = smov 111   ;;  %v690_v34 = vld [vmem:[%s939_s2] ss:$8 sm:$0x3] }
   0x4   :  { %v695_v38 = vld [vmem:[%s939_s2 + $0x1] ss:$8 sm:$0x3]  ;;  %v50_v40 = vperm.slane %v690_v34, 0  ;;  %v51_v41 = vperm.slane %v690_v34, 1  ;;  %vm46_vm0 = vcmp.lt.s32.totalorder %v697_v39, 17 }
   0x5   :  { %v71_v43 = vperm.slane %v695_v38, 0  ;;  %vm67_vm1 = vcmp.lt.s32.totalorder %v697_v39, 16  ;;  %v72_v46 = vperm.slane %v695_v38, 1  ;;  %v727_v58 = vld [vmem:[%s939_s2 + $0x2] ss:$8 sm:$0x3] }
   0x6   :  { %v732_v60 = vld [vmem:[%s939_s2 + $0x3] ss:$8 sm:$0x3]  ;;  %vm91_vm2 = vcmp.lt.s32.totalorder %v697_v39, 15  ;;  %v95_v61 = vperm.slane %v727_v58, 0  ;;  %v96_v62 = vperm.slane %v727_v58, 1 }
   0x7   :  { %vm112_vm3 = vcmp.lt.s32.totalorder %v697_v39, 1  ;;  %vm143_vm4 = vcmp.lt.s32.totalorder %v697_v39, 127  ;;  %vm188_vm5 = vcmp.lt.s32.totalorder %v697_v39, 112  ;;  %vm167_vm6 = vcmp.lt.s32.totalorder %v697_v39, 113 }
   0x8   :  { %vm212_vm7 = vcmp.lt.s32.totalorder %v697_v39, 111 }
   0x9   :  { %v36_v1 = vld.sshfl [vmem:[#allocation1] sm:$0xff pattern:$0x75316420]  ;;  %v37_v2 = vld.sshfl [vmem:[#allocation1 + $0x8] sm:$0xff pattern:$0x75316420] }
   0xa   :  { %58 = vst [vmem:[#allocation1] ss:$2 sm:$0xff] %v33_v0  ;;  %42 = vrot.lane.b32.xlu0 %v37_v2, %s610_s17  ;;  %40 = vrot.lane.b32.xlu2 %v36_v1, %s610_s17  ;;  %v116_v2 = vperm.slane %v732_v60, 0 }
  0x11   :  { %v59_v3 = vld.sshfl [vmem:[#allocation1] sm:$0xff pattern:$0x75316420]  ;;  %v60_v4 = vld.sshfl [vmem:[#allocation1 + $0x8] sm:$0xff pattern:$0x75316420] }
  0x12   :  { %63 = vrot.lane.b32.xlu1 %v59_v3, %s611_s18  ;;  %82 = vst [vmem:[#allocation1] ss:$2 sm:$0xff] %v33_v0  ;;  %65 = vrot.lane.b32.xlu2 %v60_v4, %s611_s18  ;;  %v117_v3 = vperm.slane %v732_v60, 1 }
  0x19   :  { %v83_v5 = vld.sshfl [vmem:[#allocation1] sm:$0xff pattern:$0x75316420]  ;;  %v84_v6 = vld.sshfl [vmem:[#allocation1 + $0x8] sm:$0xff pattern:$0x75316420] }
  0x1a   :  { %87 = vrot.lane.b32.xlu1 %v83_v5, %s612_s19  ;;  %103 = vst [vmem:[#allocation1] ss:$2 sm:$0xff] %v33_v0  ;;  %89 = vrot.lane.b32.xlu2 %v84_v6, %s612_s19 }
  0x21   :  { %v104_v7 = vld.sshfl [vmem:[#allocation1] sm:$0xff pattern:$0x75316420]  ;;  %v105_v8 = vld.sshfl [vmem:[#allocation1 + $0x8] sm:$0xff pattern:$0x75316420] }
  0x22   :  { %108 = vrot.lane.b32.xlu0 %v104_v7, %s613_s20  ;;  %110 = vrot.lane.b32.xlu1 %v105_v8, %s613_s20  ;;  %127 = vst [vmem:[#allocation1] ss:$2 sm:$0xff] %v33_v0 }
  0x29   :  { %v654_v9 = vld.sshfl [vmem:[#allocation1] sm:$0xff pattern:$0x75316420]  ;;  %v656_v10 = vld.sshfl [vmem:[#allocation1 + $0x8] sm:$0xff pattern:$0x75316420] }
  0x2a   :  { %134 = vst [vmem:[#allocation1] ss:$2 sm:$0xff] %v33_v0 }
  0x31   :  { %v135_v11 = vld.sshfl [vmem:[#allocation1] sm:$0xff pattern:$0x75316420]  ;;  %v136_v12 = vld.sshfl [vmem:[#allocation1 + $0x8] sm:$0xff pattern:$0x75316420] }
  0x32   :  { %158 = vst [vmem:[#allocation1] ss:$2 sm:$0xff] %v33_v0  ;;  %139 = vrot.lane.b32.xlu1 %v135_v11, %s614_s21 }
  0x39   :  { %v159_v13 = vld.sshfl [vmem:[#allocation1] sm:$0xff pattern:$0x75316420]  ;;  %v160_v14 = vld.sshfl [vmem:[#allocation1 + $0x8] sm:$0xff pattern:$0x75316420] }
  0x3a   :  { %163 = vrot.lane.b32.xlu0 %v159_v13, %s615_s22  ;;  %179 = vst [vmem:[#allocation1] ss:$2 sm:$0xff] %v33_v0  ;;  %141 = vrot.lane.b32.xlu1 %v136_v12, %s614_s21 }
  0x41   :  { %v180_v15 = vld.sshfl [vmem:[#allocation1] sm:$0xff pattern:$0x75316420]  ;;  %v181_v16 = vld.sshfl [vmem:[#allocation1 + $0x8] sm:$0xff pattern:$0x75316420] }
  0x42   :  { %203 = vst [vmem:[#allocation1] ss:$2 sm:$0xff] %v33_v0  ;;  %165 = vrot.lane.b32.xlu1 %v160_v14, %s615_s22  ;;  %184 = vrot.lane.b32.xlu2 %v180_v15, %s616_s23 }
  0x49   :  { %v204_v18 = vld.sshfl [vmem:[#allocation1] sm:$0xff pattern:$0x75316420]  ;;  %v205_v19 = vld.sshfl [vmem:[#allocation1 + $0x8] sm:$0xff pattern:$0x75316420] }
  0x4a   :  { %208 = vrot.lane.b32.xlu0 %v204_v18, %s617_s26  ;;  %315 = vst [vmem:[#allocation1] ss:$2 sm:$0xff] %v574_v17  ;;  %186 = vrot.lane.b32.xlu2 %v181_v16, %s616_s23 }
  0x51   :  { %v316_v20 = vld.sshfl [vmem:[#allocation1] sm:$0xff pattern:$0x75316420]  ;;  %v668_v21 = vld.sshfl [vmem:[#allocation1 + $0x8] sm:$0xff pattern:$0x75316420] }
  0x52   :  { %210 = vrot.lane.b32.xlu0 %v205_v19, %s617_s26  ;;  %330 = vst [vmem:[#allocation1] ss:$2 sm:$0xff] %v574_v17 }
  0x59   :  { %v332_v22 = vld.sshfl [vmem:[#allocation1 + $0x8] sm:$0xff pattern:$0x75316420]  ;;  %v331_v23 = vld.sshfl [vmem:[#allocation1] sm:$0xff pattern:$0x75316420] }
  0x5a   :  { %337 = vrot.lane.b32.xlu1 %v332_v22, %s611_s18  ;;  %335 = vrot.lane.b32.xlu0 %v331_v23, %s611_s18  ;;  %348 = vst [vmem:[#allocation1] ss:$2 sm:$0xff] %v574_v17  ;;  %v770_v23 = vld [vmem:[%s939_s2 + $0x5] ss:$8 sm:$0x3] }
  0x61   :  { %v673_v24 = vld.sshfl [vmem:[#allocation1] sm:$0xff pattern:$0x75316420]  ;;  %v350_v25 = vld.sshfl [vmem:[#allocation1 + $0x8] sm:$0xff pattern:$0x75316420] }
  0x62   :  { %363 = vst [vmem:[#allocation1] ss:$2 sm:$0xff] %v574_v17 }
  0x64   :  { %v41_v36 = vpop.permute.xlu2 %40 }
  0x69   :  { %v675_v26 = vld.sshfl [vmem:[#allocation1] sm:$0xff pattern:$0x75316420]  ;;  %v677_v27 = vld.sshfl [vmem:[#allocation1 + $0x8] sm:$0xff pattern:$0x75316420] }
  0x6a   :  { %381 = vst [vmem:[#allocation1] ss:$2 sm:$0xff] %v574_v17 }
  0x6c   :  { %v66_v52 = vpop.permute.xlu2 %65 }
  0x71   :  { %v679_v28 = vld.sshfl [vmem:[#allocation1] sm:$0xff pattern:$0x75316420]  ;;  %v681_v29 = vld.sshfl [vmem:[#allocation1 + $0x8] sm:$0xff pattern:$0x75316420] }
  0x72   :  { %388 = vst [vmem:[#allocation1] ss:$2 sm:$0xff] %v574_v17 }
  0x74   :  { %v90_v4 = vpop.permute.xlu2 %89 }
  0x79   :  { %v390_v30 = vld.sshfl [vmem:[#allocation1 + $0x8] sm:$0xff pattern:$0x75316420]  ;;  %v389_v31 = vld.sshfl [vmem:[#allocation1] sm:$0xff pattern:$0x75316420] }
  0x7a   :  { %395 = vrot.lane.b32.xlu1 %v390_v30, %s614_s21  ;;  %393 = vrot.lane.b32.xlu0 %v389_v31, %s614_s21  ;;  %406 = vst [vmem:[#allocation1] ss:$2 sm:$0xff] %v574_v17 }
  0x7c   :  { %v43_v42 = vpop.permute.xlu0 %42 }
  0x7d   :  { %v47_v44 = vsel %vm46_vm0, %v41_v36, %v43_v42  ;;  %v48_v45 = vsel %vm46_vm0, %v43_v42, %v41_v36 }
  0x7e   :  { %v54_v49 = vmul.f32 %v50_v40, %v48_v45  ;;  %v55_v50 = vmul.f32 %v51_v41, %v47_v44 }
  0x80   :  { %v56_v51 = vpack.c.bf16 %v55_v50, %v54_v49 }
  0x81   :  { %v408_v32 = vld.sshfl [vmem:[#allocation1 + $0x8] sm:$0xff pattern:$0x75316420]  ;;  %v407_v33 = vld.sshfl [vmem:[#allocation1] sm:$0xff pattern:$0x75316420] }
  0x82   :  { %413 = vrot.lane.b32.xlu2 %v408_v32, %s615_s22  ;;  %411 = vrot.lane.b32.xlu1 %v407_v33, %s615_s22  ;;  %421 = vst [vmem:[#allocation1] ss:$2 sm:$0xff] %v574_v17 }
  0x83   :  { %57 = vst [vmem:[#allocation2] sm:$0x33] %v56_v51  ;;  %v132_v51 = vpack.c.bf16 %v656_v10, %v654_v9 }
  0x84   :  { %v64_v37 = vpop.permute.xlu1 %63 }
  0x85   :  { %v68_v54 = vsel %vm67_vm1, %v64_v37, %v66_v52  ;;  %v69_v55 = vsel %vm67_vm1, %v66_v52, %v64_v37  ;;  %133 = vst [vmem:[#allocation2 + $0x10] sm:$0x33] %v132_v51 }
  0x86   :  { %v75_v56 = vmul.f32 %v71_v43, %v69_v55  ;;  %v76_v57 = vmul.f32 %v72_v46, %v68_v54 }
  0x88   :  { %v77_v59 = vpack.c.bf16 %v76_v57, %v75_v56 }
  0x89   :  { %v423_v47 = vld.sshfl [vmem:[#allocation1 + $0x8] sm:$0xff pattern:$0x75316420]  ;;  %v422_v48 = vld.sshfl [vmem:[#allocation1] sm:$0xff pattern:$0x75316420] }
  0x8a   :  { %320 = vrot.lane.b32.xlu1 %v316_v20, %s610_s17  ;;  %428 = vrot.lane.b32.xlu0 %v423_v47, %s616_s23  ;;  %439 = vst [vmem:[#allocation1] ss:$2 sm:$0xff] %v574_v17  ;;  %v79_v1 = vrot.slane %v77_v59, 6 }
  0x8b   :  { %426 = vrot.lane.b32.xlu2 %v422_v48, %s616_s23  ;;  %v802_v48 = vld [vmem:[%s939_s2 + $0x6] ss:$8 sm:$0x3] }
  0x8c   :  { %v88_v53 = vpop.permute.xlu1 %87  ;;  %81 = vst [vmem:[#allocation2] sm:$0xcc] %v79_v1  ;;  %v171_v54 = vperm.slane %v802_v48, 0  ;;  %v172_v55 = vperm.slane %v802_v48, 1 }
  0x8d   :  { %v92_v7 = vsel %vm91_vm2, %v88_v53, %v90_v4  ;;  %v93_v8 = vsel %vm91_vm2, %v90_v4, %v88_v53 }
  0x8e   :  { %v99_v13 = vmul.f32 %v95_v61, %v93_v8  ;;  %v100_v14 = vmul.f32 %v96_v62, %v92_v7 }
  0x90   :  { %v101_v17 = vpack.c.bf16 %v100_v14, %v99_v13 }
  0x91   :  { %v441_v63 = vld.sshfl [vmem:[#allocation1 + $0x8] sm:$0xff pattern:$0x75316420]  ;;  %v440_v0 = vld.sshfl [vmem:[#allocation1] sm:$0xff pattern:$0x75316420] }
  0x92   :  { %446 = vrot.lane.b32.xlu0 %v441_v63, %s617_s26  ;;  %355 = vrot.lane.b32.xlu1 %v350_v25, %s612_s19  ;;  %102 = vst [vmem:[#allocation2 + $0x8] sm:$0x33] %v101_v17  ;;  %v147_v25 = vperm.slane %v770_v23, 0 }
  0x93   :  { %444 = vrot.lane.b32.xlu2 %v440_v0, %s617_s26  ;;  %v386_v0 = vpack.c.bf16 %v681_v29, %v679_v28 }
  0x94   :  { %v109_v5 = vpop.permute.xlu0 %108  ;;  %v111_v6 = vpop.permute.xlu1 %110 }
  0x95   :  { %v113_v11 = vsel %vm112_vm3, %v109_v5, %v111_v6  ;;  %v114_v12 = vsel %vm112_vm3, %v111_v6, %v109_v5  ;;  %v822_v6 = vld [vmem:[%s939_s2 + $0x10] ss:$8 sm:$0x3] }
  0x96   :  { %v120_v15 = vmul.f32 %v116_v2, %v114_v12  ;;  %v121_v16 = vmul.f32 %v117_v3, %v113_v11  ;;  %v216_v7 = vperm.slane %v822_v6, 0  ;;  %v217_v8 = vperm.slane %v822_v6, 1 }
  0x98   :  { %v122_v18 = vpack.c.bf16 %v121_v16, %v120_v15 }
  0x9a   :  { %370 = vrot.lane.b32.xlu0 %v677_v27, %s613_s20  ;;  %v124_v19 = vrot.slane %v122_v18, 6 }
  0x9b   :  { %368 = vrot.lane.b32.xlu2 %v675_v26, %s613_s20  ;;  %v777_v26 = vld [vmem:[%s939_s2 + $0x7] ss:$8 sm:$0x3] }
  0x9c   :  { %126 = vst [vmem:[#allocation2 + $0x8] sm:$0xcc] %v124_v19  ;;  %v185_v20 = vpop.permute.xlu2 %184  ;;  %v193_v27 = vperm.slane %v777_v26, 1 }
  0xa2   :  { %353 = vrot.lane.b32.xlu0 %v673_v24, %s612_s19  ;;  %v148_v24 = vperm.slane %v770_v23, 1  ;;  %v864_v23 = vld [vmem:[%s940_s1] sm:$0x3] }
  0xa3   :  { %322 = vrot.lane.b32.xlu2 %v668_v21, %s610_s17  ;;  %v192_v21 = vperm.slane %v777_v26, 0 }
  0xa4   :  { %v140_v22 = vpop.permute.xlu1 %139  ;;  %v187_v30 = vpop.permute.xlu2 %186 }
  0xa5   :  { %v189_v31 = vsel %vm188_vm5, %v185_v20, %v187_v30  ;;  %v190_v32 = vsel %vm188_vm5, %v187_v30, %v185_v20 }
  0xa6   :  { %v196_v35 = vmul.f32 %v192_v21, %v189_v31  ;;  %v197_v36 = vmul.f32 %v193_v27, %v190_v32 }
  0xa8   :  { %v198_v47 = vpack.c.bf16 %v197_v36, %v196_v35  ;;  %v558_v35 = vld [vmem:[#allocation2] sm:$0xf]  ;;  %v594_v36 = vld [vmem:[#allocation2 + $0x4] sm:$0xf] }
  0xaa   :  { %v200_v50 = vrot.slane %v198_v47, 6 }
  0xac   :  { %v142_v33 = vpop.permute.xlu1 %141  ;;  %v164_v52 = vpop.permute.xlu0 %163  ;;  %202 = vst [vmem:[#allocation2 + $0x18] sm:$0xcc] %v200_v50  ;;  %v560_v50 = vld [vmem:[#allocation2 + $0x8] sm:$0xf0] }
  0xad   :  { %v144_v37 = vsel %vm143_vm4, %v140_v22, %v142_v33  ;;  %v145_v42 = vsel %vm143_vm4, %v142_v33, %v140_v22 }
  0xae   :  { %v151_v44 = vmul.f32 %v147_v25, %v144_v37  ;;  %v152_v45 = vmul.f32 %v148_v24, %v145_v42 }
  0xb0   :  { %v153_v49 = vpack.c.bf16 %v152_v45, %v151_v44 }
  0xb2   :  { %v155_v53 = vrot.slane %v153_v49, 6  ;;  %v595_v49 = vld [vmem:[#allocation2 + $0x4] sm:$0xf0] }
  0xb4   :  { %157 = vst [vmem:[#allocation2 + $0x10] sm:$0xcc] %v155_v53  ;;  %v166_v56 = vpop.permute.xlu1 %165  ;;  %v563_v53 = vor.u32 %v594_v36, %v560_v50 }
  0xb5   :  { %v168_v57 = vsel %vm167_vm6, %v164_v52, %v166_v56  ;;  %v169_v59 = vsel %vm167_vm6, %v166_v56, %v164_v52  ;;  %v559_v52 = vor.u32 %v595_v49, %v558_v35 }
  0xb6   :  { %v175_v9 = vmul.f32 %v171_v54, %v168_v57  ;;  %v176_v10 = vmul.f32 %v172_v55, %v169_v59 }
  0xb8   :  { %v177_v63 = vpack.c.bf16 %v176_v10, %v175_v9 }
  0xba   :  { %178 = vst [vmem:[#allocation2 + $0x18] sm:$0x33] %v177_v63 }
  0xbb   :  { %v566_v4 = vld [vmem:[#allocation2 + $0x10] sm:$0xf]  ;;  %v596_v5 = vld [vmem:[#allocation2 + $0x14] sm:$0xf] }
  0xbc   :  { %v209_v1 = vpop.permute.xlu0 %208  ;;  %387 = vst [vmem:[#allocation2 + $0x10] sm:$0x33] %v386_v0 }
  0xc1   :  { %v597_v44 = vld [vmem:[#allocation2 + $0x14] sm:$0xf0]  ;;  %v568_v45 = vld [vmem:[#allocation2 + $0x18] sm:$0xf0] }
  0xc2   :  { %v567_v38 = vor.u32 %v597_v44, %v566_v4 }
  0xc4   :  { %v211_v11 = vpop.permute.xlu0 %210 }
  0xc5   :  { %v213_v12 = vsel %vm212_vm7, %v209_v1, %v211_v11  ;;  %v214_v28 = vsel %vm212_vm7, %v211_v11, %v209_v1 }
  0xc6   :  { %v220_v29 = vmul.f32 %v216_v7, %v213_v12  ;;  %v221_v13 = vmul.f32 %v217_v8, %v214_v28 }
  0xc8   :  { %v222_v14 = vpack.c.bf16 %v221_v13, %v220_v29 }
  0xca   :  { %223 = vst [vmem:[#allocation2 + $0x20] sm:$0x33] %v222_v14 }
  0xcc   :  { %v338_v15 = vpop.permute.xlu1 %337  ;;  %v336_v16 = vpop.permute.xlu0 %335 }
  0xcd   :  { %v339_v17 = vsel %vm67_vm1, %v336_v16, %v338_v15  ;;  %v340_v18 = vsel %vm67_vm1, %v338_v15, %v336_v16 }
  0xce   :  { %v341_v19 = vmul.f32 %v340_v18, %v71_v43  ;;  %v342_v20 = vmul.f32 %v339_v17, %v72_v46  ;;  %v571_v46 = vor.u32 %v596_v5, %v568_v45 }
  0xd0   :  { %v343_v22 = vpack.c.bf16 %v342_v20, %v341_v19 }
  0xd1   :  { %v228_v30 = vld [vmem:[#allocation2 + $0x20] sm:$0x33] }
  0xd2   :  { %v242_v31 = vunpack.c.l.b16 %v228_v30  ;;  %v243_v32 = vunpack.c.h.b16 %v228_v30  ;;  %v345_v33 = vrot.slane %v343_v22, 6 }
  0xd4   :  { %v248_v37 = vpack.c.b16 %v242_v31, %v242_v31  ;;  %v249_v42 = vpack.c.b16 %v243_v32, %v243_v32  ;;  %347 = vst [vmem:[#allocation2] sm:$0xcc] %v345_v33 }
  0xd6   :  { %v260_v47 = vsel %vm258_vm8, %v248_v37, 0  ;;  %v263_v43 = vsel %vm258_vm8, %v249_v42, 0 }
  0xd7   :  { %270 = vmatpush.bf16.msra.mxu0 %v260_v47  ;;  %283 = vmatpush.bf16.msra.mxu1 %v263_v43 }
  0xdb   :  { %271 = vmatpush.bf16.msra.mxu0 %v567_v38  ;;  %284 = vmatpush.bf16.msra.mxu1 %v571_v46 }
  0xdc   :  { %v414_v51 = vpop.permute.xlu2 %413 }
  0xdf   :  { %272 = vmatpush.bf16.msra.mxu0 %v559_v52  ;;  %285 = vmatpush.bf16.msra.mxu1 %v563_v53 }
  0xe2   :  { %572 = vmatmul.msk.bf16.vlgmr.msra.gmra.mxu0 %vm254_vm9, %v864_v23  ;;  %573 = vmatmul.msk.bf16.vlgmr.msra.gmra.mxu1 %vm254_vm9, %v864_v23 }
  0xe5   :  { %v427_v56 = vpop.permute.xlu2 %426 }
  0xec   :  { %v396_v57 = vpop.permute.xlu1 %395  ;;  %v394_v59 = vpop.permute.xlu0 %393 }
  0xed   :  { %v445_v9 = vpop.permute.xlu2 %444  ;;  %v397_v10 = vsel %vm143_vm4, %v394_v59, %v396_v57  ;;  %v398_v63 = vsel %vm143_vm4, %v396_v57, %v394_v59 }
  0xee   :  { %v399_v0 = vmul.f32 %v397_v10, %v147_v25  ;;  %v400_v1 = vmul.f32 %v398_v63, %v148_v24 }
  0xf0   :  { %v401_v4 = vpack.c.bf16 %v400_v1, %v399_v0 }
  0xf2   :  { %v403_v5 = vrot.slane %v401_v4, 6 }
  0xf4   :  { %405 = vst [vmem:[#allocation2 + $0x10] sm:$0xcc] %v403_v5  ;;  %v412_v11 = vpop.permute.xlu1 %411 }
  0xf5   :  { %v415_v12 = vsel %vm167_vm6, %v412_v11, %v414_v51  ;;  %v416_v28 = vsel %vm167_vm6, %v414_v51, %v412_v11  ;;  %v369_v29 = vpop.permute.xlu2 %368 }
  0xf6   :  { %v417_v13 = vmul.f32 %v415_v12, %v171_v54  ;;  %v418_v25 = vmul.f32 %v416_v28, %v172_v55 }
  0xf8   :  { %v419_v14 = vpack.c.bf16 %v418_v25, %v417_v13 }
  0xfa   :  { %420 = vst [vmem:[#allocation2 + $0x18] sm:$0x33] %v419_v14 }
  0xfb   :  { %v585_v57 = vld [vmem:[#allocation2 + $0x10] sm:$0xf]  ;;  %v600_v59 = vld [vmem:[#allocation2 + $0x14] sm:$0xf] }
  0xfc   :  { %v321_v24 = vpop.permute.xlu1 %320  ;;  %v429_v15 = vpop.permute.xlu0 %428 }
  0xfd   :  { %v430_v16 = vsel %vm188_vm5, %v427_v56, %v429_v15  ;;  %v431_v17 = vsel %vm188_vm5, %v429_v15, %v427_v56  ;;  %v323_v54 = vpop.permute.xlu2 %322 }
  0xfe   :  { %v432_v48 = vmul.f32 %v430_v16, %v192_v21  ;;  %v433_v55 = vmul.f32 %v431_v17, %v193_v27  ;;  %v324_v18 = vsel %vm46_vm0, %v321_v24, %v323_v54  ;;  %v325_v19 = vsel %vm46_vm0, %v323_v54, %v321_v24 }
  0xff   :  { %v326_v20 = vmul.f32 %v325_v19, %v50_v40  ;;  %v327_v22 = vmul.f32 %v324_v18, %v51_v41 }
 0x100   :  { %v434_v30 = vpack.c.bf16 %v433_v55, %v432_v48 }
 0x101   :  { %v328_v31 = vpack.c.bf16 %v327_v22, %v326_v20 }
 0x102   :  { %v436_v32 = vrot.slane %v434_v30, 6 }
 0x103   :  { %329 = vst [vmem:[#allocation2] sm:$0x33] %v328_v31 }
 0x104   :  { %438 = vst [vmem:[#allocation2 + $0x18] sm:$0xcc] %v436_v32  ;;  %v447_v21 = vpop.permute.xlu0 %446  ;;  %v356_v6 = vpop.permute.xlu1 %355 }
 0x105   :  { %v448_v26 = vsel %vm212_vm7, %v445_v9, %v447_v21  ;;  %v449_v27 = vsel %vm212_vm7, %v447_v21, %v445_v9 }
 0x106   :  { %v450_v33 = vmul.f32 %v448_v26, %v216_v7  ;;  %v451_v40 = vmul.f32 %v449_v27, %v217_v8 }
 0x108   :  { %v452_v34 = vpack.c.bf16 %v451_v40, %v450_v33 }
 0x10a   :  { %453 = vst [vmem:[#allocation2 + $0x20] sm:$0x33] %v452_v34  ;;  %v598_v58 = vld [vmem:[#allocation2 + $0x4] sm:$0xf] }
 0x10b   :  { %v601_v52 = vld [vmem:[#allocation2 + $0x14] sm:$0xf0]  ;;  %v587_v53 = vld [vmem:[#allocation2 + $0x18] sm:$0xf0] }
 0x10c   :  { %v371_v41 = vpop.permute.xlu0 %370  ;;  %v586_v9 = vor.u32 %v601_v52, %v585_v57  ;;  %v590_v39 = vor.u32 %v600_v59, %v587_v53 }
 0x10d   :  { %v372_v35 = vsel %vm112_vm3, %v369_v29, %v371_v41  ;;  %v373_v36 = vsel %vm112_vm3, %v371_v41, %v369_v29 }
 0x10e   :  { %v374_v37 = vmul.f32 %v373_v36, %v116_v2  ;;  %v375_v42 = vmul.f32 %v372_v35, %v117_v3 }
 0x110   :  { %v376_v44 = vpack.c.bf16 %v375_v42, %v374_v37 }
 0x111   :  { %v458_v7 = vld [vmem:[#allocation2 + $0x20] sm:$0x33] }
 0x112   :  { %v378_v45 = vrot.slane %v376_v44, 6  ;;  %v472_v8 = vunpack.c.l.b16 %v458_v7  ;;  %v473_v47 = vunpack.c.h.b16 %v458_v7 }
 0x114   :  { %380 = vst [vmem:[#allocation2 + $0x8] sm:$0xcc] %v378_v45  ;;  %v354_v43 = vpop.permute.xlu0 %353  ;;  %v478_v38 = vpack.c.b16 %v472_v8, %v472_v8  ;;  %v479_v46 = vpack.c.b16 %v473_v47, %v473_v47 }
 0x115   :  { %v357_v49 = vsel %vm91_vm2, %v354_v43, %v356_v6  ;;  %v358_v50 = vsel %vm91_vm2, %v356_v6, %v354_v43 }
 0x116   :  { %v359_v60 = vmul.f32 %v358_v50, %v95_v61  ;;  %v360_v2 = vmul.f32 %v357_v49, %v96_v62  ;;  %v485_v3 = vsel %vm258_vm8, %v478_v38, 0  ;;  %v488_v51 = vsel %vm258_vm8, %v479_v46, 0  ;;  %v577_v61 = vld [vmem:[#allocation2] sm:$0xf] }
 0x117   :  { %495 = vmatpush.bf16.msra.mxu2 %v485_v3  ;;  %508 = vmatpush.bf16.msra.mxu3 %v488_v51 }
 0x118   :  { %v361_v56 = vpack.c.bf16 %v360_v2, %v359_v60 }
 0x11a   :  { %362 = vst [vmem:[#allocation2 + $0x8] sm:$0x33] %v361_v56 }
 0x11b   :  { %496 = vmatpush.bf16.msra.mxu2 %v586_v9  ;;  %509 = vmatpush.bf16.msra.mxu3 %v590_v39 }
 0x121   :  { %v599_v10 = vld [vmem:[#allocation2 + $0x4] sm:$0xf0]  ;;  %v579_v62 = vld [vmem:[#allocation2 + $0x8] sm:$0xf0] }
 0x122   :  { %v578_v63 = vor.u32 %v599_v10, %v577_v61  ;;  %v582_v0 = vor.u32 %v598_v58, %v579_v62 }
 0x124   :  { %497 = vmatpush.bf16.msra.mxu2 %v578_v63  ;;  %510 = vmatpush.bf16.msra.mxu3 %v582_v0 }
 0x127   :  { %591 = vmatmul.msk.bf16.vlgmr.msra.gmra.mxu2 %vm254_vm9, %v864_v23  ;;  %592 = vmatmul.msk.bf16.vlgmr.msra.gmra.mxu3 %vm254_vm9, %v864_v23 }
 0x15f   :  { %v274_v1 = vpop.f32.mrf.mxu0  ;;  %v287_v4 = vpop.f32.mrf.mxu1 }
 0x160   :  { %v293_v5 = vrot.slane %v287_v4, 4  ;;  %v298_v11 = vsel %vm294_vm10, %v274_v1, 0.0  ;;  %v299_v12 = vsel %vm294_vm10, %v287_v4, 0.0  ;;  %v304_v14 = vmul.f32 %v274_v1, %v274_v1 }
 0x161   :  { %v300_v29 = vadd.f32 %v299_v12, %v298_v11  ;;  %v305_v23 = vmul.f32 %v287_v4, %v287_v4 }
 0x162   :  { %v295_v28 = vsel %vm294_vm10, %v274_v1, %v293_v5  ;;  %v306_v24 = vsel %vm294_vm10, %v304_v14, 0.0 }
 0x163   :  { %297 = vst [vmem:[%s941_s3] sm:$0xff] %v295_v28  ;;  %301 = vadd.xlane.f32.xlu2 %v300_v29  ;;  %v307_v15 = vsel %vm294_vm10, %v305_v23, 0.0 }
 0x164   :  { %v308_v16 = vadd.f32 %v307_v15, %v306_v24 }
 0x166   :  { %309 = vadd.xlane.f32.xlu1 %v308_v16 }
 0x167   :  { %v276_v13 = vpop.f32.mrf.mxu0  ;;  %v289_v25 = vpop.f32.mrf.mxu1 }
 0x1aa   :  { %v499_v17 = vpop.f32.mrf.mxu2  ;;  %v512_v54 = vpop.f32.mrf.mxu3 }
 0x1ab   :  { %v529_v48 = vmul.f32 %v499_v17, %v499_v17  ;;  %v518_v55 = vrot.slane %v512_v54, 4  ;;  %v530_v18 = vmul.f32 %v512_v54, %v512_v54  ;;  %v523_v19 = vsel %vm294_vm10, %v499_v17, 0.0 }
 0x1ac   :  { %v524_v20 = vsel %vm294_vm10, %v512_v54, 0.0 }
 0x1ad   :  { %v519_v22 = vsel %vm294_vm10, %v499_v17, %v518_v55  ;;  %v525_v30 = vadd.f32 %v524_v20, %v523_v19  ;;  %v531_v31 = vsel %vm294_vm10, %v529_v48, 0.0  ;;  %v532_v32 = vsel %vm294_vm10, %v530_v18, 0.0 }
 0x1ae   :  { %593 = vst [vmem:[%s941_s3 + $0x8] sm:$0xff] %v519_v22  ;;  %v533_v21 = vadd.f32 %v532_v32, %v531_v31 }
 0x1af   :  { %526 = vadd.xlane.f32.xlu0 %v525_v30 }
 0x1b0   :  { %534 = vadd.xlane.f32.xlu2 %v533_v21 }
 0x1b2   :  { %v501_v26 = vpop.f32.mrf.mxu2  ;;  %v514_v27 = vpop.f32.mrf.mxu3 }
 0x1d6   :  { %v302_v33 = vpop.xlane.xlu2 %301 }
 0x1d9   :  { %v310_v34 = vpop.xlane.xlu1 %309 }
 0x222   :  { %v527_v40 = vpop.xlane.xlu0 %526 }
 0x223   :  { %v528_v41 = vadd.f32 %v527_v40, %v302_v33  ;;  %v535_v35 = vpop.xlane.xlu2 %534 }
 0x224   :  { %v536_v36 = vadd.f32 %v535_v35, %v310_v34 }
 0x225   :  { %538 = vst.msk [vmem:[%s942_s4] sm:$0xf] %vm537_vm11, %v528_v41 }
 0x226   :  { %540 = vst.msk [vmem:[%s942_s4] sm:$0xf] %vm539_vm12, %v536_v36 }

// kernel: basic_block_forward.4
= control target key start
LH: loop header
LB: loop body
LE: loop exit
PB: predicated region body
PF: predicated region fallthrough
CT: control target
= control target key end

     0   :  { %v645_v0 = vmov 0   ;;  %v646_v3 = vmov 839922192   ;;  %s650_s29 = smov 1   ;;  %s651_s30 = smov 127   ;;  %v73_v47 = vlaneseq  ;;  %vm287_vm8 = vcmask 1041408   ;;  %s999_s1 = inlined_call_operand.vmem [shape: f32[4,1], index: 1, kind: input, shape index: {}]   ;;  %s1000_s2 = inlined_call_operand.vmem [shape: f32[4,1], index: 2, kind: input, shape index: {}]   ;;  %s1001_s0 = inlined_call_operand.vmem [shape: f32[2,4,256], index: 0, kind: input, shape index: {}]   ;;  %s1002_s4 = inlined_call_operand.vmem [shape: f32[9,256], index: 4, kind: input, shape index: {}]   ;;  %s1003_s3 = inlined_call_operand.vmem [shape: bf16[4,36], index: 3, kind: input, shape index: {}]   ;;  %s1004_s5 = inlined_call_operand.vmem [shape: f32[2,4,256], index: 5, kind: output, shape index: {0}]   ;;  %s1005_s6 = inlined_call_operand.vmem [shape: f32[1,4,2], index: 6, kind: output, shape index: {1}]  }
   0x1   :  { %644 = vset.pattern.permute.xlu0 %v645_v0  ;;  %v39_v1 = vld [vmem:[%s999_s1] sm:$0xf]  ;;  %v47_v4 = vunpack.c.l.s4 %v646_v3  ;;  %v606_v7 = vld [vmem:[%s1001_s0 + $0x8] sm:$0xff]  ;;  %s647_s1 = smov 17   ;;  %s652_s7 = smov 113   ;;  %vm283_vm9 = vcmask 293888  }
   0x2   :  { %44 = vperm.xlu0 %644, %v39_v1   ;;  %v40_v2 = vld [vmem:[%s1000_s2] sm:$0xf]  ;;  %s648_s2 = smov 16   ;;  %s653_s8 = smov 112   ;;  %v742_v48 = vand.u32 127, %v73_v47  ;;  %vm323_vm10 = vcmask 1043456  }
   0x3   :  { %v48_v5 = vunpack.c.0.s8 %v47_v4  ;;  %v41_v10 = vld [vmem:[%s1001_s0] sm:$0xff]  ;;  %s649_s0 = smov 15   ;;  %s654_s9 = smov 111   ;;  %vm569_vm11 = vcmask 3072   ;;  %vm571_vm12 = vcmask 11272  }
   0x4   :  { %v747_v49 = vld [vmem:[%s1002_s4] ss:$8 sm:$0x3]  ;;  %vm75_vm0 = vcmp.lt.s32.totalorder %v742_v48, 17  ;;  %vm96_vm1 = vcmp.lt.s32.totalorder %v742_v48, 16  ;;  %vm120_vm2 = vcmp.lt.s32.totalorder %v742_v48, 15 }
   0x5   :  { %v79_v52 = vperm.slane %v747_v49, 0  ;;  %v80_v53 = vperm.slane %v747_v49, 1  ;;  %v766_v60 = vld [vmem:[%s1002_s4 + $0x1] ss:$8 sm:$0x3]  ;;  %vm141_vm3 = vcmp.lt.s32.totalorder %v742_v48, 1 }
   0x6   :  { %v100_v0 = vperm.slane %v766_v60, 0  ;;  %v101_v1 = vperm.slane %v766_v60, 1  ;;  %vm172_vm4 = vcmp.lt.s32.totalorder %v742_v48, 127  ;;  %vm196_vm5 = vcmp.lt.s32.totalorder %v742_v48, 113 }
   0x7   :  { %vm217_vm6 = vcmp.lt.s32.totalorder %v742_v48, 112  ;;  %vm241_vm7 = vcmp.lt.s32.totalorder %v742_v48, 111 }
   0xa   :  { %54 = vperm.xlu0 %644, %v40_v2  }
  0x74   :  { %v45_v6 = vpop.permute.xlu0 %44 }
  0x75   :  { %v49_v8 = vperm.slane %v45_v6, %v48_v5 }
  0x77   :  { %v343_v9 = vmul.f32 %v606_v7, %v49_v8  ;;  %v51_v12 = vmul.f32 %v49_v8, %v41_v10 }
  0x7c   :  { %v55_v11 = vpop.permute.xlu0 %54 }
  0x7d   :  { %v59_v13 = vperm.slane %v55_v11, %v48_v5 }
  0x7f   :  { %v61_v14 = vadd.f32 %v59_v13, %v51_v12  ;;  %v344_v15 = vadd.f32 %v343_v9, %v59_v13  ;;  %v785_v9 = vld [vmem:[%s1002_s4 + $0x2] ss:$8 sm:$0x3] }
  0x80   :  { %v124_v13 = vperm.slane %v785_v9, 0 }
  0x81   :  { %v62_v16 = vmax.f32 %v61_v14, 0.0  ;;  %v716_v34 = vmax.f32 %v344_v15, 0.0  ;;  %v125_v14 = vperm.slane %v785_v9, 1 }
  0x83   :  { %64 = vst [vmem:[#allocation1] ss:$2 sm:$0xff] %v62_v16 }
  0x8a   :  { %v65_v17 = vld.sshfl [vmem:[#allocation1] sm:$0xff pattern:$0x75316420]  ;;  %v66_v18 = vld.sshfl [vmem:[#allocation1 + $0x8] sm:$0xff pattern:$0x75316420] }
  0x8b   :  { %87 = vst [vmem:[#allocation1] ss:$2 sm:$0xff] %v62_v16  ;;  %71 = vrot.lane.b32.xlu2 %v66_v18, %s647_s1  ;;  %69 = vrot.lane.b32.xlu1 %v65_v17, %s647_s1 }
  0x92   :  { %v88_v19 = vld.sshfl [vmem:[#allocation1] sm:$0xff pattern:$0x75316420]  ;;  %v89_v20 = vld.sshfl [vmem:[#allocation1 + $0x8] sm:$0xff pattern:$0x75316420] }
  0x93   :  { %111 = vst [vmem:[#allocation1] ss:$2 sm:$0xff] %v62_v16  ;;  %94 = vrot.lane.b32.xlu1 %v89_v20, %s648_s2  ;;  %92 = vrot.lane.b32.xlu0 %v88_v19, %s648_s2 }
  0x9a   :  { %v112_v21 = vld.sshfl [vmem:[#allocation1] sm:$0xff pattern:$0x75316420]  ;;  %v113_v22 = vld.sshfl [vmem:[#allocation1 + $0x8] sm:$0xff pattern:$0x75316420] }
  0x9b   :  { %132 = vst [vmem:[#allocation1] ss:$2 sm:$0xff] %v62_v16  ;;  %118 = vrot.lane.b32.xlu1 %v113_v22, %s649_s0  ;;  %116 = vrot.lane.b32.xlu0 %v112_v21, %s649_s0 }
  0xa2   :  { %v133_v23 = vld.sshfl [vmem:[#allocation1] sm:$0xff pattern:$0x75316420]  ;;  %v134_v24 = vld.sshfl [vmem:[#allocation1 + $0x8] sm:$0xff pattern:$0x75316420] }
  0xa3   :  { %156 = vst [vmem:[#allocation1] ss:$2 sm:$0xff] %v62_v16  ;;  %139 = vrot.lane.b32.xlu0 %v134_v24, %s650_s29  ;;  %137 = vrot.lane.b32.xlu2 %v133_v23, %s650_s29  ;;  %v805_v23 = vld [vmem:[%s1002_s4 + $0x3] ss:$8 sm:$0x3] }
  0xaa   :  { %v157_v25 = vld.sshfl [vmem:[#allocation1] sm:$0xff pattern:$0x75316420]  ;;  %v158_v26 = vld.sshfl [vmem:[#allocation1 + $0x8] sm:$0xff pattern:$0x75316420] }
  0xab   :  { %163 = vst [vmem:[#allocation1] ss:$2 sm:$0xff] %v62_v16  ;;  %v161_v27 = vpack.c.bf16 %v158_v26, %v157_v25  ;;  %v810_v25 = vld [vmem:[%s1002_s4 + $0x5] ss:$8 sm:$0x3]  ;;  %v145_v26 = vperm.slane %v805_v23, 0 }
  0xad   :  { %162 = vst [vmem:[#allocation2 + $0x10] sm:$0x33] %v161_v27  ;;  %v146_v27 = vperm.slane %v805_v23, 1 }
  0xb2   :  { %v164_v28 = vld.sshfl [vmem:[#allocation1] sm:$0xff pattern:$0x75316420]  ;;  %v165_v29 = vld.sshfl [vmem:[#allocation1 + $0x8] sm:$0xff pattern:$0x75316420] }
  0xb3   :  { %168 = vrot.lane.b32.xlu2 %v164_v28, %s651_s30  ;;  %187 = vst [vmem:[#allocation1] ss:$2 sm:$0xff] %v62_v16  ;;  %v176_v28 = vperm.slane %v810_v25, 0 }
  0xba   :  { %v189_v30 = vld.sshfl [vmem:[#allocation1 + $0x8] sm:$0xff pattern:$0x75316420]  ;;  %v188_v31 = vld.sshfl [vmem:[#allocation1] sm:$0xff pattern:$0x75316420] }
  0xbb   :  { %170 = vrot.lane.b32.xlu2 %v165_v29, %s651_s30  ;;  %194 = vrot.lane.b32.xlu0 %v189_v30, %s652_s7  ;;  %208 = vst [vmem:[#allocation1] ss:$2 sm:$0xff] %v62_v16  ;;  %v177_v29 = vperm.slane %v810_v25, 1 }
  0xc2   :  { %v210_v32 = vld.sshfl [vmem:[#allocation1 + $0x8] sm:$0xff pattern:$0x75316420]  ;;  %v209_v33 = vld.sshfl [vmem:[#allocation1] sm:$0xff pattern:$0x75316420] }
  0xc3   :  { %192 = vrot.lane.b32.xlu2 %v188_v31, %s652_s7  ;;  %215 = vrot.lane.b32.xlu1 %v210_v32, %s653_s8  ;;  %232 = vst [vmem:[#allocation1] ss:$2 sm:$0xff] %v62_v16 }
  0xc4   :  { %213 = vrot.lane.b32.xlu0 %v209_v33, %s653_s8 }
  0xca   :  { %v233_v35 = vld.sshfl [vmem:[#allocation1] sm:$0xff pattern:$0x75316420]  ;;  %v234_v36 = vld.sshfl [vmem:[#allocation1 + $0x8] sm:$0xff pattern:$0x75316420] }
  0xcb   :  { %237 = vrot.lane.b32.xlu1 %v233_v35, %s654_s9  ;;  %347 = vst [vmem:[#allocation1] ss:$2 sm:$0xff] %v716_v34 }
  0xd2   :  { %v348_v37 = vld.sshfl [vmem:[#allocation1] sm:$0xff pattern:$0x75316420]  ;;  %v720_v38 = vld.sshfl [vmem:[#allocation1 + $0x8] sm:$0xff pattern:$0x75316420] }
  0xd3   :  { %239 = vrot.lane.b32.xlu1 %v234_v36, %s654_s9  ;;  %362 = vst [vmem:[#allocation1] ss:$2 sm:$0xff] %v716_v34 }
  0xda   :  { %v364_v39 = vld.sshfl [vmem:[#allocation1 + $0x8] sm:$0xff pattern:$0x75316420]  ;;  %v363_v40 = vld.sshfl [vmem:[#allocation1] sm:$0xff pattern:$0x75316420] }
  0xdb   :  { %369 = vrot.lane.b32.xlu0 %v364_v39, %s648_s2  ;;  %380 = vst [vmem:[#allocation1] ss:$2 sm:$0xff] %v716_v34  ;;  %367 = vrot.lane.b32.xlu2 %v363_v40, %s648_s2 }
  0xe2   :  { %v727_v41 = vld.sshfl [vmem:[#allocation1] sm:$0xff pattern:$0x75316420]  ;;  %v729_v42 = vld.sshfl [vmem:[#allocation1 + $0x8] sm:$0xff pattern:$0x75316420] }
  0xe3   :  { %395 = vst [vmem:[#allocation1] ss:$2 sm:$0xff] %v716_v34 }
  0xe5   :  { %v72_v54 = vpop.permute.xlu2 %71 }
  0xea   :  { %v732_v43 = vld.sshfl [vmem:[#allocation1] sm:$0xff pattern:$0x75316420]  ;;  %v734_v44 = vld.sshfl [vmem:[#allocation1 + $0x8] sm:$0xff pattern:$0x75316420] }
  0xeb   :  { %413 = vst [vmem:[#allocation1] ss:$2 sm:$0xff] %v716_v34 }
  0xf2   :  { %v737_v45 = vld.sshfl [vmem:[#allocation1] sm:$0xff pattern:$0x75316420]  ;;  %v739_v46 = vld.sshfl [vmem:[#allocation1 + $0x8] sm:$0xff pattern:$0x75316420] }
  0xf3   :  { %420 = vst [vmem:[#allocation1] ss:$2 sm:$0xff] %v716_v34 }
  0xfa   :  { %v422_v50 = vld.sshfl [vmem:[#allocation1 + $0x8] sm:$0xff pattern:$0x75316420]  ;;  %v421_v51 = vld.sshfl [vmem:[#allocation1] sm:$0xff pattern:$0x75316420] }
  0xfb   :  { %427 = vrot.lane.b32.xlu0 %v422_v50, %s651_s30  ;;  %425 = vrot.lane.b32.xlu2 %v421_v51, %s651_s30  ;;  %438 = vst [vmem:[#allocation1] ss:$2 sm:$0xff] %v716_v34 }
  0xfd   :  { %v70_v55 = vpop.permute.xlu1 %69  ;;  %v138_v4 = vpop.permute.xlu2 %137 }
  0xfe   :  { %v76_v56 = vsel %vm75_vm0, %v70_v55, %v72_v54  ;;  %v77_v57 = vsel %vm75_vm0, %v72_v54, %v70_v55 }
  0xff   :  { %v83_v58 = vmul.f32 %v79_v52, %v77_v57  ;;  %v84_v59 = vmul.f32 %v80_v53, %v76_v56  ;;  %v418_v56 = vpack.c.bf16 %v739_v46, %v737_v45 }
 0x101   :  { %v85_v61 = vpack.c.bf16 %v84_v59, %v83_v58 }
 0x102   :  { %v440_v62 = vld.sshfl [vmem:[#allocation1 + $0x8] sm:$0xff pattern:$0x75316420]  ;;  %v439_v63 = vld.sshfl [vmem:[#allocation1] sm:$0xff pattern:$0x75316420] }
 0x103   :  { %86 = vst [vmem:[#allocation2] sm:$0x33] %v85_v61  ;;  %445 = vrot.lane.b32.xlu1 %v440_v62, %s652_s7  ;;  %443 = vrot.lane.b32.xlu0 %v439_v63, %s652_s7 }
 0x104   :  { %453 = vst [vmem:[#allocation1] ss:$2 sm:$0xff] %v716_v34 }
 0x105   :  { %v95_v2 = vpop.permute.xlu1 %94  ;;  %v93_v3 = vpop.permute.xlu0 %92 }
 0x106   :  { %v97_v5 = vsel %vm96_vm1, %v93_v3, %v95_v2  ;;  %v98_v6 = vsel %vm96_vm1, %v95_v2, %v93_v3  ;;  %v871_v2 = vld [vmem:[%s1002_s4 + $0x7] ss:$8 sm:$0x3] }
 0x107   :  { %v104_v7 = vmul.f32 %v100_v0, %v98_v6  ;;  %v105_v8 = vmul.f32 %v101_v1, %v97_v5  ;;  %v221_v3 = vperm.slane %v871_v2, 0 }
 0x109   :  { %v106_v10 = vpack.c.bf16 %v105_v8, %v104_v7 }
 0x10b   :  { %v108_v11 = vrot.slane %v106_v10, 6  ;;  %352 = vrot.lane.b32.xlu0 %v348_v37, %s647_s1  ;;  %v455_v12 = vld.sshfl [vmem:[#allocation1 + $0x8] sm:$0xff pattern:$0x75316420] }
 0x10c   :  { %460 = vrot.lane.b32.xlu2 %v455_v12, %s653_s8  ;;  %v454_v15 = vld.sshfl [vmem:[#allocation1] sm:$0xff pattern:$0x75316420] }
 0x10d   :  { %110 = vst [vmem:[#allocation2] sm:$0xcc] %v108_v11  ;;  %458 = vrot.lane.b32.xlu1 %v454_v15, %s653_s8  ;;  %v119_v16 = vpop.permute.xlu1 %118  ;;  %v117_v17 = vpop.permute.xlu0 %116 }
 0x10e   :  { %471 = vst [vmem:[#allocation1] ss:$2 sm:$0xff] %v716_v34  ;;  %v121_v18 = vsel %vm120_vm2, %v117_v17, %v119_v16  ;;  %v122_v19 = vsel %vm120_vm2, %v119_v16, %v117_v17  ;;  %v169_v20 = vpop.permute.xlu2 %168  ;;  %v887_v17 = vld [vmem:[%s1002_s4 + $0x10] ss:$8 sm:$0x3] }
 0x10f   :  { %v128_v21 = vmul.f32 %v124_v13, %v122_v19  ;;  %v129_v22 = vmul.f32 %v125_v14, %v121_v18  ;;  %v245_v18 = vperm.slane %v887_v17, 0  ;;  %v246_v19 = vperm.slane %v887_v17, 1 }
 0x111   :  { %v130_v24 = vpack.c.bf16 %v129_v22, %v128_v21 }
 0x113   :  { %131 = vst [vmem:[#allocation2 + $0x8] sm:$0x33] %v130_v24  ;;  %387 = vrot.lane.b32.xlu0 %v729_v42, %s649_s0 }
 0x115   :  { %v473_v30 = vld.sshfl [vmem:[#allocation1 + $0x8] sm:$0xff pattern:$0x75316420]  ;;  %v472_v31 = vld.sshfl [vmem:[#allocation1] sm:$0xff pattern:$0x75316420]  ;;  %v140_v32 = vpop.permute.xlu0 %139 }
 0x116   :  { %478 = vrot.lane.b32.xlu2 %v473_v30, %s654_s9  ;;  %476 = vrot.lane.b32.xlu1 %v472_v31, %s654_s9  ;;  %v142_v33 = vsel %vm141_vm3, %v138_v4, %v140_v32  ;;  %v143_v34 = vsel %vm141_vm3, %v140_v32, %v138_v4  ;;  %v171_v35 = vpop.permute.xlu2 %170  ;;  %v222_v4 = vperm.slane %v871_v2, 1  ;;  %v23_v2 = vld [vmem:[%s1003_s3] sm:$0x3] }
 0x117   :  { %v149_v36 = vmul.f32 %v145_v26, %v143_v34  ;;  %v150_v37 = vmul.f32 %v146_v27, %v142_v33  ;;  %v173_v39 = vsel %vm172_vm4, %v169_v20, %v171_v35  ;;  %v174_v40 = vsel %vm172_vm4, %v171_v35, %v169_v20 }
 0x118   :  { %v180_v42 = vmul.f32 %v176_v28, %v173_v39  ;;  %v181_v47 = vmul.f32 %v177_v29, %v174_v40 }
 0x119   :  { %v151_v50 = vpack.c.bf16 %v150_v37, %v149_v36 }
 0x11a   :  { %v182_v51 = vpack.c.bf16 %v181_v47, %v180_v42 }
 0x11b   :  { %v153_v54 = vrot.slane %v151_v50, 6 }
 0x11c   :  { %v184_v55 = vrot.slane %v182_v51, 6  ;;  %v590_v51 = vld [vmem:[#allocation2] sm:$0xf] }
 0x11d   :  { %155 = vst [vmem:[#allocation2 + $0x8] sm:$0xcc] %v153_v54  ;;  %v626_v54 = vld [vmem:[#allocation2 + $0x4] sm:$0xf] }
 0x11e   :  { %186 = vst [vmem:[#allocation2 + $0x10] sm:$0xcc] %v184_v55  ;;  %402 = vrot.lane.b32.xlu2 %v734_v44, %s650_s29  ;;  %400 = vrot.lane.b32.xlu1 %v732_v43, %s650_s29  ;;  %v855_v44 = vld [vmem:[%s1002_s4 + $0x6] ss:$8 sm:$0x3]  ;;  %v193_v46 = vpop.permute.xlu2 %192 }
 0x11f   :  { %v200_v43 = vperm.slane %v855_v44, 0  ;;  %v201_v45 = vperm.slane %v855_v44, 1 }
 0x125   :  { %v844_v57 = vld [vmem:[#allocation2 + $0x10] sm:$0xf]  ;;  %v846_v58 = vld [vmem:[#allocation2 + $0x14] sm:$0xf] }
 0x126   :  { %385 = vrot.lane.b32.xlu2 %v727_v41, %s649_s0  ;;  %354 = vrot.lane.b32.xlu1 %v720_v38, %s647_s1  ;;  %419 = vst [vmem:[#allocation2 + $0x10] sm:$0x33] %v418_v56 }
 0x12d   :  { %v195_v59 = vpop.permute.xlu0 %194 }
 0x12e   :  { %v197_v41 = vsel %vm196_vm5, %v193_v46, %v195_v59  ;;  %v198_v38 = vsel %vm196_vm5, %v195_v59, %v193_v46 }
 0x12f   :  { %v204_v61 = vmul.f32 %v200_v43, %v197_v41  ;;  %v205_v62 = vmul.f32 %v201_v45, %v198_v38  ;;  %v627_v38 = vld [vmem:[#allocation2 + $0x4] sm:$0xf0] }
 0x131   :  { %v206_v63 = vpack.c.bf16 %v205_v62, %v204_v61  ;;  %v592_v61 = vld [vmem:[#allocation2 + $0x8] sm:$0xf0]  ;;  %v591_v62 = vor.u32 %v627_v38, %v590_v51 }
 0x133   :  { %207 = vst [vmem:[#allocation2 + $0x18] sm:$0x33] %v206_v63  ;;  %v595_v63 = vor.u32 %v626_v54, %v592_v61 }
 0x135   :  { %v216_v5 = vpop.permute.xlu1 %215  ;;  %v368_v32 = vpop.permute.xlu2 %367 }
 0x136   :  { %v214_v6 = vpop.permute.xlu0 %213 }
 0x137   :  { %v218_v7 = vsel %vm217_vm6, %v214_v6, %v216_v5  ;;  %v219_v8 = vsel %vm217_vm6, %v216_v5, %v214_v6 }
 0x138   :  { %v225_v10 = vmul.f32 %v221_v3, %v218_v7  ;;  %v226_v11 = vmul.f32 %v222_v4, %v219_v8 }
 0x13a   :  { %v227_v12 = vpack.c.bf16 %v226_v11, %v225_v10 }
 0x13c   :  { %v229_v15 = vrot.slane %v227_v12, 6 }
 0x13d   :  { %v238_v16 = vpop.permute.xlu1 %237 }
 0x13e   :  { %231 = vst [vmem:[#allocation2 + $0x18] sm:$0xcc] %v229_v15 }
 0x145   :  { %v240_v20 = vpop.permute.xlu1 %239  ;;  %v629_v41 = vld [vmem:[#allocation2 + $0x14] sm:$0xf0] }
 0x146   :  { %v242_v21 = vsel %vm241_vm7, %v238_v16, %v240_v20  ;;  %v243_v22 = vsel %vm241_vm7, %v240_v20, %v238_v16  ;;  %v599_v60 = vor.u32 %v629_v41, %v844_v57 }
 0x147   :  { %v249_v24 = vmul.f32 %v245_v18, %v242_v21  ;;  %v250_v30 = vmul.f32 %v246_v19, %v243_v22 }
 0x149   :  { %v251_v31 = vpack.c.bf16 %v250_v30, %v249_v24 }
 0x14b   :  { %252 = vst [vmem:[#allocation2 + $0x20] sm:$0x33] %v251_v31 }
 0x14d   :  { %v370_v33 = vpop.permute.xlu0 %369 }
 0x14e   :  { %v371_v34 = vsel %vm96_vm1, %v368_v32, %v370_v33  ;;  %v372_v35 = vsel %vm96_vm1, %v370_v33, %v368_v32 }
 0x14f   :  { %v373_v36 = vmul.f32 %v372_v35, %v100_v0  ;;  %v374_v37 = vmul.f32 %v371_v34, %v101_v1  ;;  %v600_v0 = vld [vmem:[#allocation2 + $0x18] sm:$0xf0] }
 0x150   :  { %v603_v1 = vor.u32 %v846_v58, %v600_v0 }
 0x151   :  { %v375_v39 = vpack.c.bf16 %v374_v37, %v373_v36 }
 0x152   :  { %v257_v40 = vld [vmem:[#allocation2 + $0x20] sm:$0x33] }
 0x153   :  { %v377_v42 = vrot.slane %v375_v39, 6  ;;  %v271_v47 = vunpack.c.l.b16 %v257_v40  ;;  %v272_v50 = vunpack.c.h.b16 %v257_v40 }
 0x155   :  { %v277_v55 = vpack.c.b16 %v271_v47, %v271_v47  ;;  %v278_v56 = vpack.c.b16 %v272_v50, %v272_v50  ;;  %379 = vst [vmem:[#allocation2] sm:$0xcc] %v377_v42  ;;  %v426_v5 = vpop.permute.xlu2 %425 }
 0x157   :  { %v289_v46 = vsel %vm287_vm8, %v277_v55, 0  ;;  %v292_v59 = vsel %vm287_vm8, %v278_v56, 0 }
 0x158   :  { %299 = vmatpush.bf16.msra.mxu0 %v289_v46  ;;  %312 = vmatpush.bf16.msra.mxu1 %v292_v59 }
 0x15c   :  { %300 = vmatpush.bf16.msra.mxu0 %v599_v60  ;;  %313 = vmatpush.bf16.msra.mxu1 %v603_v1 }
 0x160   :  { %301 = vmatpush.bf16.msra.mxu0 %v591_v62  ;;  %314 = vmatpush.bf16.msra.mxu1 %v595_v63 }
 0x163   :  { %604 = vmatmul.msk.bf16.vlgmr.msra.gmra.mxu0 %vm283_vm9, %v23_v2  ;;  %605 = vmatmul.msk.bf16.vlgmr.msra.gmra.mxu1 %vm283_vm9, %v23_v2 }
 0x166   :  { %v461_v6 = vpop.permute.xlu2 %460 }
 0x16d   :  { %v428_v7 = vpop.permute.xlu0 %427 }
 0x16e   :  { %v429_v8 = vsel %vm172_vm4, %v426_v5, %v428_v7  ;;  %v430_v10 = vsel %vm172_vm4, %v428_v7, %v426_v5 }
 0x16f   :  { %v431_v57 = vmul.f32 %v429_v8, %v176_v28  ;;  %v432_v58 = vmul.f32 %v430_v10, %v177_v29 }
 0x170   :  { %v479_v12 = vpop.permute.xlu2 %478 }
 0x171   :  { %v433_v11 = vpack.c.bf16 %v432_v58, %v431_v57 }
 0x173   :  { %v435_v15 = vrot.slane %v433_v11, 6 }
 0x175   :  { %437 = vst [vmem:[#allocation2 + $0x10] sm:$0xcc] %v435_v15  ;;  %v446_v16 = vpop.permute.xlu1 %445  ;;  %v444_v20 = vpop.permute.xlu0 %443 }
 0x176   :  { %v447_v21 = vsel %vm196_vm5, %v444_v20, %v446_v16  ;;  %v448_v22 = vsel %vm196_vm5, %v446_v16, %v444_v20 }
 0x177   :  { %v449_v24 = vmul.f32 %v447_v21, %v200_v43  ;;  %v450_v28 = vmul.f32 %v448_v22, %v201_v45 }
 0x178   :  { %v403_v29 = vpop.permute.xlu2 %402 }
 0x179   :  { %v451_v25 = vpack.c.bf16 %v450_v28, %v449_v24 }
 0x17b   :  { %452 = vst [vmem:[#allocation2 + $0x18] sm:$0x33] %v451_v25 }
 0x17c   :  { %v617_v7 = vld [vmem:[#allocation2 + $0x10] sm:$0xf]  ;;  %v632_v8 = vld [vmem:[#allocation2 + $0x14] sm:$0xf] }
 0x17d   :  { %v353_v30 = vpop.permute.xlu0 %352 }
 0x17f   :  { %v459_v31 = vpop.permute.xlu1 %458 }
 0x180   :  { %v462_v32 = vsel %vm217_vm6, %v459_v31, %v461_v6  ;;  %v463_v33 = vsel %vm217_vm6, %v461_v6, %v459_v31  ;;  %v386_v45 = vpop.permute.xlu2 %385 }
 0x181   :  { %v464_v34 = vmul.f32 %v462_v32, %v221_v3  ;;  %v465_v43 = vmul.f32 %v463_v33, %v222_v4 }
 0x183   :  { %v466_v35 = vpack.c.bf16 %v465_v43, %v464_v34 }
 0x185   :  { %v468_v44 = vrot.slane %v466_v35, 6  ;;  %v388_v36 = vpop.permute.xlu0 %387 }
 0x186   :  { %v389_v37 = vsel %vm120_vm2, %v386_v45, %v388_v36  ;;  %v390_v39 = vsel %vm120_vm2, %v388_v36, %v386_v45 }
 0x187   :  { %470 = vst [vmem:[#allocation2 + $0x18] sm:$0xcc] %v468_v44  ;;  %v391_v40 = vmul.f32 %v390_v39, %v124_v13  ;;  %v392_v3 = vmul.f32 %v389_v37, %v125_v14 }
 0x188   :  { %v477_v42 = vpop.permute.xlu1 %476 }
 0x189   :  { %v393_v4 = vpack.c.bf16 %v392_v3, %v391_v40  ;;  %v480_v47 = vsel %vm241_vm7, %v477_v42, %v479_v12  ;;  %v481_v50 = vsel %vm241_vm7, %v479_v12, %v477_v42 }
 0x18a   :  { %v482_v9 = vmul.f32 %v480_v47, %v245_v18  ;;  %v483_v13 = vmul.f32 %v481_v50, %v246_v19 }
 0x18b   :  { %394 = vst [vmem:[#allocation2 + $0x8] sm:$0x33] %v393_v4 }
 0x18c   :  { %v484_v14 = vpack.c.bf16 %v483_v13, %v482_v9 }
 0x18e   :  { %485 = vst [vmem:[#allocation2 + $0x20] sm:$0x33] %v484_v14  ;;  %v633_v63 = vld [vmem:[#allocation2 + $0x14] sm:$0xf0]  ;;  %v619_v5 = vld [vmem:[#allocation2 + $0x18] sm:$0xf0] }
 0x18f   :  { %v618_v10 = vor.u32 %v633_v63, %v617_v7  ;;  %v622_v48 = vor.u32 %v632_v8, %v619_v5 }
 0x190   :  { %v401_v51 = vpop.permute.xlu1 %400 }
 0x191   :  { %v404_v54 = vsel %vm141_vm3, %v401_v51, %v403_v29  ;;  %v405_v55 = vsel %vm141_vm3, %v403_v29, %v401_v51 }
 0x192   :  { %v406_v56 = vmul.f32 %v405_v55, %v145_v26  ;;  %v407_v46 = vmul.f32 %v404_v54, %v146_v27 }
 0x194   :  { %v408_v18 = vpack.c.bf16 %v407_v46, %v406_v56 }
 0x195   :  { %v490_v59 = vld [vmem:[#allocation2 + $0x20] sm:$0x33] }
 0x196   :  { %v410_v17 = vrot.slane %v408_v18, 6  ;;  %v504_v19 = vunpack.c.l.b16 %v490_v59  ;;  %v505_v41 = vunpack.c.h.b16 %v490_v59 }
 0x198   :  { %412 = vst [vmem:[#allocation2 + $0x8] sm:$0xcc] %v410_v17  ;;  %v355_v0 = vpop.permute.xlu1 %354  ;;  %v510_v60 = vpack.c.b16 %v504_v19, %v504_v19  ;;  %v511_v1 = vpack.c.b16 %v505_v41, %v505_v41 }
 0x199   :  { %v356_v38 = vsel %vm75_vm0, %v353_v30, %v355_v0  ;;  %v357_v61 = vsel %vm75_vm0, %v355_v0, %v353_v30 }
 0x19a   :  { %v358_v26 = vmul.f32 %v357_v61, %v79_v52  ;;  %v359_v23 = vmul.f32 %v356_v38, %v80_v53  ;;  %v517_v27 = vsel %vm287_vm8, %v510_v60, 0  ;;  %v520_v62 = vsel %vm287_vm8, %v511_v1, 0 }
 0x19b   :  { %527 = vmatpush.bf16.msra.mxu2 %v517_v27  ;;  %540 = vmatpush.bf16.msra.mxu3 %v520_v62 }
 0x19c   :  { %v360_v6 = vpack.c.bf16 %v359_v23, %v358_v26 }
 0x19e   :  { %361 = vst [vmem:[#allocation2] sm:$0x33] %v360_v6 }
 0x19f   :  { %528 = vmatpush.bf16.msra.mxu2 %v618_v10  ;;  %541 = vmatpush.bf16.msra.mxu3 %v622_v48  ;;  %v631_v52 = vld [vmem:[#allocation2 + $0x4] sm:$0xf0]  ;;  %v611_v53 = vld [vmem:[#allocation2 + $0x8] sm:$0xf0] }
 0x1a5   :  { %v609_v57 = vld [vmem:[#allocation2] sm:$0xf]  ;;  %v630_v49 = vld [vmem:[#allocation2 + $0x4] sm:$0xf] }
 0x1a6   :  { %v610_v58 = vor.u32 %v631_v52, %v609_v57  ;;  %v614_v11 = vor.u32 %v630_v49, %v611_v53 }
 0x1a8   :  { %529 = vmatpush.bf16.msra.mxu2 %v610_v58  ;;  %542 = vmatpush.bf16.msra.mxu3 %v614_v11 }
 0x1ab   :  { %623 = vmatmul.msk.bf16.vlgmr.msra.gmra.mxu2 %vm283_vm9, %v23_v2  ;;  %624 = vmatmul.msk.bf16.vlgmr.msra.gmra.mxu3 %vm283_vm9, %v23_v2 }
 0x1e0   :  { %v303_v12 = vpop.f32.mrf.mxu0  ;;  %v316_v15 = vpop.f32.mrf.mxu1 }
 0x1e1   :  { %v322_v16 = vrot.slane %v316_v15, 4  ;;  %v327_v24 = vsel %vm323_vm10, %v303_v12, 0.0  ;;  %v328_v28 = vsel %vm323_vm10, %v316_v15, 0.0  ;;  %v333_v29 = vmul.f32 %v303_v12, %v303_v12 }
 0x1e2   :  { %v329_v25 = vadd.f32 %v328_v28, %v327_v24  ;;  %v334_v30 = vmul.f32 %v316_v15, %v316_v15 }
 0x1e3   :  { %v324_v20 = vsel %vm323_vm10, %v303_v12, %v322_v16  ;;  %v335_v31 = vsel %vm323_vm10, %v333_v29, 0.0 }
 0x1e4   :  { %326 = vst [vmem:[%s1004_s5] sm:$0xff] %v324_v20  ;;  %330 = vadd.xlane.f32.xlu1 %v329_v25  ;;  %v336_v32 = vsel %vm323_vm10, %v334_v30, 0.0 }
 0x1e5   :  { %v337_v33 = vadd.f32 %v336_v32, %v335_v31 }
 0x1e7   :  { %338 = vadd.xlane.f32.xlu0 %v337_v33 }
 0x1e8   :  { %v305_v21 = vpop.f32.mrf.mxu0  ;;  %v318_v22 = vpop.f32.mrf.mxu1 }
 0x22e   :  { %v531_v34 = vpop.f32.mrf.mxu2  ;;  %v544_v43 = vpop.f32.mrf.mxu3 }
 0x22f   :  { %v550_v35 = vrot.slane %v544_v43, 4  ;;  %v555_v44 = vsel %vm323_vm10, %v531_v34, 0.0  ;;  %v556_v45 = vsel %vm323_vm10, %v544_v43, 0.0  ;;  %v561_v39 = vmul.f32 %v531_v34, %v531_v34 }
 0x230   :  { %v557_v37 = vadd.f32 %v556_v45, %v555_v44  ;;  %v562_v40 = vmul.f32 %v544_v43, %v544_v43 }
 0x231   :  { %v551_v36 = vsel %vm323_vm10, %v531_v34, %v550_v35  ;;  %v563_v2 = vsel %vm323_vm10, %v561_v39, 0.0 }
 0x232   :  { %625 = vst [vmem:[%s1004_s5 + $0x8] sm:$0xff] %v551_v36  ;;  %558 = vadd.xlane.f32.xlu2 %v557_v37  ;;  %v564_v4 = vsel %vm323_vm10, %v562_v40, 0.0 }
 0x233   :  { %v565_v47 = vadd.f32 %v564_v4, %v563_v2 }
 0x236   :  { %v533_v3 = vpop.f32.mrf.mxu2  ;;  %v546_v42 = vpop.f32.mrf.mxu3 }
 0x23a   :  { %566 = vadd.xlane.f32.xlu2 %v565_v47 }
 0x257   :  { %v331_v50 = vpop.xlane.xlu1 %330 }
 0x25a   :  { %v339_v14 = vpop.xlane.xlu0 %338 }
 0x2a5   :  { %v559_v9 = vpop.xlane.xlu2 %558 }
 0x2a6   :  { %v560_v13 = vadd.f32 %v559_v9, %v331_v50 }
 0x2a8   :  { %570 = vst.msk [vmem:[%s1005_s6] sm:$0xf] %vm569_vm11, %v560_v13 }
 0x2ad   :  { %v567_v51 = vpop.xlane.xlu2 %566 }
 0x2ae   :  { %v568_v54 = vadd.f32 %v567_v51, %v339_v14 }
 0x2b0   :  { %572 = vst.msk [vmem:[%s1005_s6] sm:$0xf] %vm571_vm12, %v568_v54 }

</bundles_post_ra>
